<compile_context>
chip_gen: v6e
topology: v6e:2x2x1
jax: 0.10.0
libtpu: 0.0.40
codegen_flags: <defaults>
</compile_context>

<pallas_src>
import jax
import jax.numpy as jnp
import numpy as np
from jax import lax
from jax.experimental import pallas as pl
from jax.experimental.pallas import tpu as pltpu


def _full_spec(shape):
    nd = len(shape)
    return pl.BlockSpec(shape, lambda i, _nd=nd: (0,) * _nd)


def _make_gru_fc_kernel(num_layers, T, B, H):
    """Kernel: GRU stack (hoisted input projection + unrolled recurrence) + final FC."""
    multi_layer = num_layers > 1

    def kernel(*refs):
        # refs layout:
        #   [0]              x_ref       (T*B, C)   f32   time-major flattened
        #   [1+4l+0]         w_ih_t      (in_l, 3H) bf16
        #   [1+4l+1]         w_hh_t      (H, 3H)    bf16
        #   [1+4l+2]         b_g         (1, 3H)    f32   (= b_ih + [b_hr, b_hz, 0])
        #   [1+4l+3]         b_hn        (1, H)     f32
        #   [1+4L]           w_fc_t      (H, E)     bf16
        #   [2+4L]           b_fc        (1, E)     f32
        #   [3+4L]           out_ref     (B, E)     f32
        #   [4+4L]           seq_scratch (T*B, H)   bf16  (only if num_layers > 1)
        x_ref = refs[0]
        layer_refs = refs[1:1 + 4 * num_layers]
        w_fc_ref = refs[1 + 4 * num_layers]
        b_fc_ref = refs[2 + 4 * num_layers]
        out_ref = refs[3 + 4 * num_layers]
        seq_scratch = refs[4 + 4 * num_layers] if multi_layer else None

        prev2 = x_ref[...].astype(jnp.bfloat16)          # (T*B, in)
        h = jnp.zeros((B, H), jnp.float32)

        for l in range(num_layers):
            wi = layer_refs[4 * l + 0][...]              # (in_l, 3H) bf16
            wh = layer_refs[4 * l + 1][...]              # (H, 3H)    bf16
            bg = layer_refs[4 * l + 2][...]              # (1, 3H)    f32
            bhn = layer_refs[4 * l + 3][...]             # (1, H)     f32
            last_layer = (l == num_layers - 1)

            # Hoisted input projection for ALL timesteps: one MXU matmul.
            gi = jnp.dot(prev2, wi, preferred_element_type=jnp.float32) + bg  # (T*B, 3H) f32

            h = jnp.zeros((B, H), jnp.float32)
            for t in range(T):                           # fully unrolled, static slices
                gi_t = gi[t * B:(t + 1) * B, :]          # (B, 3H)
                gh = jnp.dot(h.astype(jnp.bfloat16), wh,
                             preferred_element_type=jnp.float32)              # (B, 3H)
                r = jax.nn.sigmoid(gi_t[:, 0:H] + gh[:, 0:H])
                z = jax.nn.sigmoid(gi_t[:, H:2 * H] + gh[:, H:2 * H])
                n = jnp.tanh(gi_t[:, 2 * H:3 * H] + r * (gh[:, 2 * H:3 * H] + bhn))
                h = n + z * (h - n)
                if not last_layer:
                    seq_scratch[t * B:(t + 1) * B, :] = h.astype(jnp.bfloat16)

            if not last_layer:
                prev2 = seq_scratch[...]                 # (T*B, H) bf16

        y = jnp.dot(h.astype(jnp.bfloat16), w_fc_ref[...],
                    preferred_element_type=jnp.float32) + b_fc_ref[...]
        out_ref[...] = y.astype(out_ref.dtype)

    return kernel


def seq_encoder_wrapper_forward(x_btc, params, *, hidden_size, embed_size, num_layers):
    """x_btc: (B, T, in_size) float32.  Returns (B, embed_size) float32."""
    B, T, C = x_btc.shape
    H, E = hidden_size, embed_size

    # Time-major flatten so the kernel does ONE (T*B, in) x (in, 3H) projection per
    # layer and per-step tiles are contiguous row slices.
    x2 = jnp.transpose(x_btc, (1, 0, 2)).reshape(T * B, C)

    inputs = [x2]
    for (w_ih, w_hh, b_ih, b_hh) in params["gru"]:
        # Fold b_ih and the r/z parts of b_hh into the hoisted projection bias.
        b_g = b_ih + jnp.concatenate([b_hh[:2 * H], jnp.zeros((H,), b_hh.dtype)])
        inputs += [
            w_ih.T.astype(jnp.bfloat16),          # (in_l, 3H)
            w_hh.T.astype(jnp.bfloat16),          # (H, 3H)
            b_g.reshape(1, 3 * H),                # (1, 3H) f32
            b_hh[2 * H:].reshape(1, H),           # (1, H)  f32  (b_hn stays in-step)
        ]
    w_fc, b_fc = params["fc"]
    inputs += [w_fc.T.astype(jnp.bfloat16), b_fc.reshape(1, E)]

    in_specs = [_full_spec(a.shape) for a in inputs]
    out_spec = _full_spec((B, E))

    scratch_shapes = []
    if num_layers > 1:
        scratch_shapes.append(pltpu.VMEM((T * B, H), jnp.bfloat16))

    kernel = _make_gru_fc_kernel(num_layers, T, B, H)

    return pl.pallas_call(
        kernel,
        out_shape=jax.ShapeDtypeStruct((B, E), jnp.float32),
        grid=(1,),
        in_specs=in_specs,
        out_specs=out_spec,
        scratch_shapes=scratch_shapes,
        compiler_params=pltpu.CompilerParams(dimension_semantics=("arbitrary",)),
    )(*inputs)


def reference_forward(x_btc, params):
    """Pure-JAX f32 reference (matches torch nn.GRU + nn.Linear semantics)."""
    h_seq = x_btc
    B = x_btc.shape[0]
    for (w_ih, w_hh, b_ih, b_hh) in params["gru"]:
        H = w_hh.shape[1]

        def step(h, xt, w_ih=w_ih, w_hh=w_hh, b_ih=b_ih, b_hh=b_hh, H=H):
            gi = xt @ w_ih.T + b_ih
            gh = h @ w_hh.T + b_hh
            r = jax.nn.sigmoid(gi[:, :H] + gh[:, :H])
            z = jax.nn.sigmoid(gi[:, H:2 * H] + gh[:, H:2 * H])
            n = jnp.tanh(gi[:, 2 * H:] + r * gh[:, 2 * H:])
            h_new = (1.0 - z) * n + z * h
            return h_new, h_new

        h0 = jnp.zeros((B, H), jnp.float32)
        _, outs = lax.scan(step, h0, jnp.swapaxes(h_seq, 0, 1))
        h_seq = jnp.swapaxes(outs, 0, 1)
    w_fc, b_fc = params["fc"]
    return h_seq[:, -1, :] @ w_fc.T + b_fc


def init_params(key, in_size, embed_size, hidden_size, num_layers):
    """Deterministic init mimicking PyTorch defaults (uniform +-1/sqrt(fan))."""
    params = {"gru": [], "fc": None}
    k = key
    stdv = 1.0 / np.sqrt(hidden_size)
    for l in range(num_layers):
        layer_in = in_size if l == 0 else hidden_size
        k, k1, k2, k3, k4 = jax.random.split(k, 5)
        w_ih = jax.random.uniform(k1, (3 * hidden_size, layer_in), jnp.float32, -stdv, stdv)
        w_hh = jax.random.uniform(k2, (3 * hidden_size, hidden_size), jnp.float32, -stdv, stdv)
        b_ih = jax.random.uniform(k3, (3 * hidden_size,), jnp.float32, -stdv, stdv)
        b_hh = jax.random.uniform(k4, (3 * hidden_size,), jnp.float32, -stdv, stdv)
        params["gru"].append((w_ih, w_hh, b_ih, b_hh))
    k, k1, k2 = jax.random.split(k, 3)
    fc_std = 1.0 / np.sqrt(hidden_size)
    w_fc = jax.random.uniform(k1, (embed_size, hidden_size), jnp.float32, -fc_std, fc_std)
    b_fc = jax.random.uniform(k2, (embed_size,), jnp.float32, -fc_std, fc_std)
    params["fc"] = (w_fc, b_fc)
    return params


if __name__ == "__main__":
    B, T = 2, 8
    in_size, embed_size, hidden_size, num_layers = 16, 32, 32, 2

    key = jax.random.PRNGKey(0)
    kx, kp = jax.random.split(key)
    x = jax.random.normal(kx, (B, T, in_size), jnp.float32)
    params = init_params(kp, in_size, embed_size, hidden_size, num_layers)

    out = seq_encoder_wrapper_forward(
        x, params, hidden_size=hidden_size, embed_size=embed_size, num_layers=num_layers)
    out = jax.block_until_ready(out)

    ref = jax.block_until_ready(reference_forward(x, params))
    assert out.shape == (B, embed_size)
    # Tolerance loosened vs. the pure-f32 version: matmul operands are bf16 (MXU-native),
    # accumulation and gate math stay in f32.
    np.testing.assert_allclose(np.asarray(out), np.asarray(ref), atol=3e-2, rtol=3e-2)

    print("KERNEL_OK")
</pallas_src>

<mosaic_0001>
module attributes {stable_mosaic.version = 11 : i64} {
  func.func @kernel(%arg0: i32, %arg1: memref<16x16xf32, #tpu.memory_space<vmem>>, %arg2: memref<16x96xbf16, #tpu.memory_space<vmem>>, %arg3: memref<32x96xbf16, #tpu.memory_space<vmem>>, %arg4: memref<1x96xf32, #tpu.memory_space<vmem>>, %arg5: memref<1x32xf32, #tpu.memory_space<vmem>>, %arg6: memref<32x96xbf16, #tpu.memory_space<vmem>>, %arg7: memref<32x96xbf16, #tpu.memory_space<vmem>>, %arg8: memref<1x96xf32, #tpu.memory_space<vmem>>, %arg9: memref<1x32xf32, #tpu.memory_space<vmem>>, %arg10: memref<32x32xbf16, #tpu.memory_space<vmem>>, %arg11: memref<1x32xf32, #tpu.memory_space<vmem>>, %arg12: memref<2x32xf32, #tpu.memory_space<vmem>>, %arg13: memref<16x32xbf16, #tpu.memory_space<vmem>>) attributes {dimension_semantics = [#tpu.dimension_semantics<arbitrary>], iteration_bounds = array<i64: 1>, scalar_prefetch = 0 : i64, scratch_operands = 1 : i64, tpu.core_type = #tpu.core_type<tc>, window_params = [{pipeline_mode = #tpu.pipeline_mode<synchronous>, transform_indices = @transform_0, window_bounds = array<i64: 16, 16>}, {pipeline_mode = #tpu.pipeline_mode<synchronous>, transform_indices = @transform_1, window_bounds = array<i64: 16, 96>}, {pipeline_mode = #tpu.pipeline_mode<synchronous>, transform_indices = @transform_2, window_bounds = array<i64: 32, 96>}, {pipeline_mode = #tpu.pipeline_mode<synchronous>, transform_indices = @transform_3, window_bounds = array<i64: 1, 96>}, {pipeline_mode = #tpu.pipeline_mode<synchronous>, transform_indices = @transform_4, window_bounds = array<i64: 1, 32>}, {pipeline_mode = #tpu.pipeline_mode<synchronous>, transform_indices = @transform_5, window_bounds = array<i64: 32, 96>}, {pipeline_mode = #tpu.pipeline_mode<synchronous>, transform_indices = @transform_6, window_bounds = array<i64: 32, 96>}, {pipeline_mode = #tpu.pipeline_mode<synchronous>, transform_indices = @transform_7, window_bounds = array<i64: 1, 96>}, {pipeline_mode = #tpu.pipeline_mode<synchronous>, transform_indices = @transform_8, window_bounds = array<i64: 1, 32>}, {pipeline_mode = #tpu.pipeline_mode<synchronous>, transform_indices = @transform_9, window_bounds = array<i64: 32, 32>}, {pipeline_mode = #tpu.pipeline_mode<synchronous>, transform_indices = @transform_10, window_bounds = array<i64: 1, 32>}, {pipeline_mode = #tpu.pipeline_mode<synchronous>, transform_indices = @transform_11, window_bounds = array<i64: 2, 32>}]} {
    %c0 = arith.constant 0 : index
    %c0_0 = arith.constant 0 : index
    %0 = vector.load %arg1[%c0, %c0_0] : memref<16x16xf32, #tpu.memory_space<vmem>>, vector<16x16xf32>
    %1 = arith.truncf %0 : vector<16x16xf32> to vector<16x16xbf16>
    %c0_1 = arith.constant 0 : index
    %c0_2 = arith.constant 0 : index
    %2 = vector.load %arg2[%c0_1, %c0_2] : memref<16x96xbf16, #tpu.memory_space<vmem>>, vector<16x96xbf16>
    %c0_3 = arith.constant 0 : index
    %c0_4 = arith.constant 0 : index
    %3 = vector.load %arg3[%c0_3, %c0_4] : memref<32x96xbf16, #tpu.memory_space<vmem>>, vector<32x96xbf16>
    %c0_5 = arith.constant 0 : index
    %c0_6 = arith.constant 0 : index
    %4 = vector.load %arg4[%c0_5, %c0_6] : memref<1x96xf32, #tpu.memory_space<vmem>>, vector<1x96xf32>
    %c0_7 = arith.constant 0 : index
    %c0_8 = arith.constant 0 : index
    %5 = vector.load %arg5[%c0_7, %c0_8] : memref<1x32xf32, #tpu.memory_space<vmem>>, vector<1x32xf32>
    %cst = arith.constant dense<0.000000e+00> : vector<16x96xf32>
    %6 = tpu.matmul %1, %2, %cst {dimension_numbers = #tpu.dot_dimension_numbers<[1], [0], [0], [1], [0, 0, 1, 1], [], []>} : vector<16x16xbf16>, vector<16x96xbf16>, vector<16x96xf32> -> vector<16x96xf32>
    %7 = vector.broadcast %4 : vector<1x96xf32> to vector<16x96xf32>
    %8 = arith.addf %6, %7 : vector<16x96xf32>
    %cst_9 = arith.constant 0.000000e+00 : f32
    %9 = vector.broadcast %cst_9 : f32 to vector<2x32xf32>
    %10 = vector.extract_strided_slice %8 {offsets = [0, 0], sizes = [2, 96], strides = [1, 1]} : vector<16x96xf32> to vector<2x96xf32>
    %11 = arith.truncf %9 : vector<2x32xf32> to vector<2x32xbf16>
    %cst_10 = arith.constant dense<0.000000e+00> : vector<2x96xf32>
    %12 = tpu.matmul %11, %3, %cst_10 {dimension_numbers = #tpu.dot_dimension_numbers<[1], [0], [0], [1], [0, 0, 1, 1], [], []>} : vector<2x32xbf16>, vector<32x96xbf16>, vector<2x96xf32> -> vector<2x96xf32>
    %13 = vector.extract_strided_slice %10 {offsets = [0, 0], sizes = [2, 32], strides = [1, 1]} : vector<2x96xf32> to vector<2x32xf32>
    %14 = vector.extract_strided_slice %12 {offsets = [0, 0], sizes = [2, 32], strides = [1, 1]} : vector<2x96xf32> to vector<2x32xf32>
    %15 = arith.addf %13, %14 : vector<2x32xf32>
    %16 = arith.negf %15 : vector<2x32xf32>
    %17 = math.exp %16 : vector<2x32xf32>
    %cst_11 = arith.constant 1.000000e+00 : f32
    %18 = vector.broadcast %cst_11 : f32 to vector<2x32xf32>
    %19 = arith.addf %18, %17 : vector<2x32xf32>
    %20 = arith.divf %18, %19 : vector<2x32xf32>
    %21 = vector.extract_strided_slice %10 {offsets = [0, 32], sizes = [2, 32], strides = [1, 1]} : vector<2x96xf32> to vector<2x32xf32>
    %22 = vector.extract_strided_slice %12 {offsets = [0, 32], sizes = [2, 32], strides = [1, 1]} : vector<2x96xf32> to vector<2x32xf32>
    %23 = arith.addf %21, %22 : vector<2x32xf32>
    %24 = arith.negf %23 : vector<2x32xf32>
    %25 = math.exp %24 : vector<2x32xf32>
    %cst_12 = arith.constant 1.000000e+00 : f32
    %26 = vector.broadcast %cst_12 : f32 to vector<2x32xf32>
    %27 = arith.addf %26, %25 : vector<2x32xf32>
    %28 = arith.divf %26, %27 : vector<2x32xf32>
    %29 = vector.extract_strided_slice %10 {offsets = [0, 64], sizes = [2, 32], strides = [1, 1]} : vector<2x96xf32> to vector<2x32xf32>
    %30 = vector.extract_strided_slice %12 {offsets = [0, 64], sizes = [2, 32], strides = [1, 1]} : vector<2x96xf32> to vector<2x32xf32>
    %31 = vector.broadcast %5 : vector<1x32xf32> to vector<2x32xf32>
    %32 = arith.addf %30, %31 : vector<2x32xf32>
    %33 = arith.mulf %20, %32 : vector<2x32xf32>
    %34 = arith.addf %29, %33 : vector<2x32xf32>
    %35 = math.tanh %34 : vector<2x32xf32>
    %36 = arith.subf %9, %35 : vector<2x32xf32>
    %37 = arith.mulf %28, %36 : vector<2x32xf32>
    %38 = arith.addf %35, %37 : vector<2x32xf32>
    %39 = arith.truncf %38 : vector<2x32xf32> to vector<2x32xbf16>
    %c0_13 = arith.constant 0 : index
    %c0_14 = arith.constant 0 : index
    %40 = vector.load %arg13[%c0_13, %c0_14] : memref<16x32xbf16, #tpu.memory_space<vmem>>, vector<2x32xbf16>
    tpu.vector_store %arg13[%c0_13, %c0_14], %39 {strides = array<i32>} : memref<16x32xbf16, #tpu.memory_space<vmem>>, vector<2x32xbf16>,
    %41 = vector.extract_strided_slice %8 {offsets = [2, 0], sizes = [2, 96], strides = [1, 1]} : vector<16x96xf32> to vector<2x96xf32>
    %42 = arith.truncf %38 : vector<2x32xf32> to vector<2x32xbf16>
    %cst_15 = arith.constant dense<0.000000e+00> : vector<2x96xf32>
    %43 = tpu.matmul %42, %3, %cst_15 {dimension_numbers = #tpu.dot_dimension_numbers<[1], [0], [0], [1], [0, 0, 1, 1], [], []>} : vector<2x32xbf16>, vector<32x96xbf16>, vector<2x96xf32> -> vector<2x96xf32>
    %44 = vector.extract_strided_slice %41 {offsets = [0, 0], sizes = [2, 32], strides = [1, 1]} : vector<2x96xf32> to vector<2x32xf32>
    %45 = vector.extract_strided_slice %43 {offsets = [0, 0], sizes = [2, 32], strides = [1, 1]} : vector<2x96xf32> to vector<2x32xf32>
    %46 = arith.addf %44, %45 : vector<2x32xf32>
    %47 = arith.negf %46 : vector<2x32xf32>
    %48 = math.exp %47 : vector<2x32xf32>
    %cst_16 = arith.constant 1.000000e+00 : f32
    %49 = vector.broadcast %cst_16 : f32 to vector<2x32xf32>
    %50 = arith.addf %49, %48 : vector<2x32xf32>
    %51 = arith.divf %49, %50 : vector<2x32xf32>
    %52 = vector.extract_strided_slice %41 {offsets = [0, 32], sizes = [2, 32], strides = [1, 1]} : vector<2x96xf32> to vector<2x32xf32>
    %53 = vector.extract_strided_slice %43 {offsets = [0, 32], sizes = [2, 32], strides = [1, 1]} : vector<2x96xf32> to vector<2x32xf32>
    %54 = arith.addf %52, %53 : vector<2x32xf32>
    %55 = arith.negf %54 : vector<2x32xf32>
    %56 = math.exp %55 : vector<2x32xf32>
    %cst_17 = arith.constant 1.000000e+00 : f32
    %57 = vector.broadcast %cst_17 : f32 to vector<2x32xf32>
    %58 = arith.addf %57, %56 : vector<2x32xf32>
    %59 = arith.divf %57, %58 : vector<2x32xf32>
    %60 = vector.extract_strided_slice %41 {offsets = [0, 64], sizes = [2, 32], strides = [1, 1]} : vector<2x96xf32> to vector<2x32xf32>
    %61 = vector.extract_strided_slice %43 {offsets = [0, 64], sizes = [2, 32], strides = [1, 1]} : vector<2x96xf32> to vector<2x32xf32>
    %62 = vector.broadcast %5 : vector<1x32xf32> to vector<2x32xf32>
    %63 = arith.addf %61, %62 : vector<2x32xf32>
    %64 = arith.mulf %51, %63 : vector<2x32xf32>
    %65 = arith.addf %60, %64 : vector<2x32xf32>
    %66 = math.tanh %65 : vector<2x32xf32>
    %67 = arith.subf %38, %66 : vector<2x32xf32>
    %68 = arith.mulf %59, %67 : vector<2x32xf32>
    %69 = arith.addf %66, %68 : vector<2x32xf32>
    %70 = arith.truncf %69 : vector<2x32xf32> to vector<2x32xbf16>
    %c2 = arith.constant 2 : index
    %c0_18 = arith.constant 0 : index
    %71 = vector.load %arg13[%c2, %c0_18] : memref<16x32xbf16, #tpu.memory_space<vmem>>, vector<2x32xbf16>
    tpu.vector_store %arg13[%c2, %c0_18], %70 {strides = array<i32>} : memref<16x32xbf16, #tpu.memory_space<vmem>>, vector<2x32xbf16>,
    %72 = vector.extract_strided_slice %8 {offsets = [4, 0], sizes = [2, 96], strides = [1, 1]} : vector<16x96xf32> to vector<2x96xf32>
    %73 = arith.truncf %69 : vector<2x32xf32> to vector<2x32xbf16>
    %cst_19 = arith.constant dense<0.000000e+00> : vector<2x96xf32>
    %74 = tpu.matmul %73, %3, %cst_19 {dimension_numbers = #tpu.dot_dimension_numbers<[1], [0], [0], [1], [0, 0, 1, 1], [], []>} : vector<2x32xbf16>, vector<32x96xbf16>, vector<2x96xf32> -> vector<2x96xf32>
    %75 = vector.extract_strided_slice %72 {offsets = [0, 0], sizes = [2, 32], strides = [1, 1]} : vector<2x96xf32> to vector<2x32xf32>
    %76 = vector.extract_strided_slice %74 {offsets = [0, 0], sizes = [2, 32], strides = [1, 1]} : vector<2x96xf32> to vector<2x32xf32>
    %77 = arith.addf %75, %76 : vector<2x32xf32>
    %78 = arith.negf %77 : vector<2x32xf32>
    %79 = math.exp %78 : vector<2x32xf32>
    %cst_20 = arith.constant 1.000000e+00 : f32
    %80 = vector.broadcast %cst_20 : f32 to vector<2x32xf32>
    %81 = arith.addf %80, %79 : vector<2x32xf32>
    %82 = arith.divf %80, %81 : vector<2x32xf32>
    %83 = vector.extract_strided_slice %72 {offsets = [0, 32], sizes = [2, 32], strides = [1, 1]} : vector<2x96xf32> to vector<2x32xf32>
    %84 = vector.extract_strided_slice %74 {offsets = [0, 32], sizes = [2, 32], strides = [1, 1]} : vector<2x96xf32> to vector<2x32xf32>
    %85 = arith.addf %83, %84 : vector<2x32xf32>
    %86 = arith.negf %85 : vector<2x32xf32>
    %87 = math.exp %86 : vector<2x32xf32>
    %cst_21 = arith.constant 1.000000e+00 : f32
    %88 = vector.broadcast %cst_21 : f32 to vector<2x32xf32>
    %89 = arith.addf %88, %87 : vector<2x32xf32>
    %90 = arith.divf %88, %89 : vector<2x32xf32>
    %91 = vector.extract_strided_slice %72 {offsets = [0, 64], sizes = [2, 32], strides = [1, 1]} : vector<2x96xf32> to vector<2x32xf32>
    %92 = vector.extract_strided_slice %74 {offsets = [0, 64], sizes = [2, 32], strides = [1, 1]} : vector<2x96xf32> to vector<2x32xf32>
    %93 = vector.broadcast %5 : vector<1x32xf32> to vector<2x32xf32>
    %94 = arith.addf %92, %93 : vector<2x32xf32>
    %95 = arith.mulf %82, %94 : vector<2x32xf32>
    %96 = arith.addf %91, %95 : vector<2x32xf32>
    %97 = math.tanh %96 : vector<2x32xf32>
    %98 = arith.subf %69, %97 : vector<2x32xf32>
    %99 = arith.mulf %90, %98 : vector<2x32xf32>
    %100 = arith.addf %97, %99 : vector<2x32xf32>
    %101 = arith.truncf %100 : vector<2x32xf32> to vector<2x32xbf16>
    %c4 = arith.constant 4 : index
    %c0_22 = arith.constant 0 : index
    %102 = vector.load %arg13[%c4, %c0_22] : memref<16x32xbf16, #tpu.memory_space<vmem>>, vector<2x32xbf16>
    tpu.vector_store %arg13[%c4, %c0_22], %101 {strides = array<i32>} : memref<16x32xbf16, #tpu.memory_space<vmem>>, vector<2x32xbf16>,
    %103 = vector.extract_strided_slice %8 {offsets = [6, 0], sizes = [2, 96], strides = [1, 1]} : vector<16x96xf32> to vector<2x96xf32>
    %104 = arith.truncf %100 : vector<2x32xf32> to vector<2x32xbf16>
    %cst_23 = arith.constant dense<0.000000e+00> : vector<2x96xf32>
    %105 = tpu.matmul %104, %3, %cst_23 {dimension_numbers = #tpu.dot_dimension_numbers<[1], [0], [0], [1], [0, 0, 1, 1], [], []>} : vector<2x32xbf16>, vector<32x96xbf16>, vector<2x96xf32> -> vector<2x96xf32>
    %106 = vector.extract_strided_slice %103 {offsets = [0, 0], sizes = [2, 32], strides = [1, 1]} : vector<2x96xf32> to vector<2x32xf32>
    %107 = vector.extract_strided_slice %105 {offsets = [0, 0], sizes = [2, 32], strides = [1, 1]} : vector<2x96xf32> to vector<2x32xf32>
    %108 = arith.addf %106, %107 : vector<2x32xf32>
    %109 = arith.negf %108 : vector<2x32xf32>
    %110 = math.exp %109 : vector<2x32xf32>
    %cst_24 = arith.constant 1.000000e+00 : f32
    %111 = vector.broadcast %cst_24 : f32 to vector<2x32xf32>
    %112 = arith.addf %111, %110 : vector<2x32xf32>
    %113 = arith.divf %111, %112 : vector<2x32xf32>
    %114 = vector.extract_strided_slice %103 {offsets = [0, 32], sizes = [2, 32], strides = [1, 1]} : vector<2x96xf32> to vector<2x32xf32>
    %115 = vector.extract_strided_slice %105 {offsets = [0, 32], sizes = [2, 32], strides = [1, 1]} : vector<2x96xf32> to vector<2x32xf32>
    %116 = arith.addf %114, %115 : vector<2x32xf32>
    %117 = arith.negf %116 : vector<2x32xf32>
    %118 = math.exp %117 : vector<2x32xf32>
    %cst_25 = arith.constant 1.000000e+00 : f32
    %119 = vector.broadcast %cst_25 : f32 to vector<2x32xf32>
    %120 = arith.addf %119, %118 : vector<2x32xf32>
    %121 = arith.divf %119, %120 : vector<2x32xf32>
    %122 = vector.extract_strided_slice %103 {offsets = [0, 64], sizes = [2, 32], strides = [1, 1]} : vector<2x96xf32> to vector<2x32xf32>
    %123 = vector.extract_strided_slice %105 {offsets = [0, 64], sizes = [2, 32], strides = [1, 1]} : vector<2x96xf32> to vector<2x32xf32>
    %124 = vector.broadcast %5 : vector<1x32xf32> to vector<2x32xf32>
    %125 = arith.addf %123, %124 : vector<2x32xf32>
    %126 = arith.mulf %113, %125 : vector<2x32xf32>
    %127 = arith.addf %122, %126 : vector<2x32xf32>
    %128 = math.tanh %127 : vector<2x32xf32>
    %129 = arith.subf %100, %128 : vector<2x32xf32>
    %130 = arith.mulf %121, %129 : vector<2x32xf32>
    %131 = arith.addf %128, %130 : vector<2x32xf32>
    %132 = arith.truncf %131 : vector<2x32xf32> to vector<2x32xbf16>
    %c6 = arith.constant 6 : index
    %c0_26 = arith.constant 0 : index
    %133 = vector.load %arg13[%c6, %c0_26] : memref<16x32xbf16, #tpu.memory_space<vmem>>, vector<2x32xbf16>
    tpu.vector_store %arg13[%c6, %c0_26], %132 {strides = array<i32>} : memref<16x32xbf16, #tpu.memory_space<vmem>>, vector<2x32xbf16>,
    %134 = vector.extract_strided_slice %8 {offsets = [8, 0], sizes = [2, 96], strides = [1, 1]} : vector<16x96xf32> to vector<2x96xf32>
    %135 = arith.truncf %131 : vector<2x32xf32> to vector<2x32xbf16>
    %cst_27 = arith.constant dense<0.000000e+00> : vector<2x96xf32>
    %136 = tpu.matmul %135, %3, %cst_27 {dimension_numbers = #tpu.dot_dimension_numbers<[1], [0], [0], [1], [0, 0, 1, 1], [], []>} : vector<2x32xbf16>, vector<32x96xbf16>, vector<2x96xf32> -> vector<2x96xf32>
    %137 = vector.extract_strided_slice %134 {offsets = [0, 0], sizes = [2, 32], strides = [1, 1]} : vector<2x96xf32> to vector<2x32xf32>
    %138 = vector.extract_strided_slice %136 {offsets = [0, 0], sizes = [2, 32], strides = [1, 1]} : vector<2x96xf32> to vector<2x32xf32>
    %139 = arith.addf %137, %138 : vector<2x32xf32>
    %140 = arith.negf %139 : vector<2x32xf32>
    %141 = math.exp %140 : vector<2x32xf32>
    %cst_28 = arith.constant 1.000000e+00 : f32
    %142 = vector.broadcast %cst_28 : f32 to vector<2x32xf32>
    %143 = arith.addf %142, %141 : vector<2x32xf32>
    %144 = arith.divf %142, %143 : vector<2x32xf32>
    %145 = vector.extract_strided_slice %134 {offsets = [0, 32], sizes = [2, 32], strides = [1, 1]} : vector<2x96xf32> to vector<2x32xf32>
    %146 = vector.extract_strided_slice %136 {offsets = [0, 32], sizes = [2, 32], strides = [1, 1]} : vector<2x96xf32> to vector<2x32xf32>
    %147 = arith.addf %145, %146 : vector<2x32xf32>
    %148 = arith.negf %147 : vector<2x32xf32>
    %149 = math.exp %148 : vector<2x32xf32>
    %cst_29 = arith.constant 1.000000e+00 : f32
    %150 = vector.broadcast %cst_29 : f32 to vector<2x32xf32>
    %151 = arith.addf %150, %149 : vector<2x32xf32>
    %152 = arith.divf %150, %151 : vector<2x32xf32>
    %153 = vector.extract_strided_slice %134 {offsets = [0, 64], sizes = [2, 32], strides = [1, 1]} : vector<2x96xf32> to vector<2x32xf32>
    %154 = vector.extract_strided_slice %136 {offsets = [0, 64], sizes = [2, 32], strides = [1, 1]} : vector<2x96xf32> to vector<2x32xf32>
    %155 = vector.broadcast %5 : vector<1x32xf32> to vector<2x32xf32>
    %156 = arith.addf %154, %155 : vector<2x32xf32>
    %157 = arith.mulf %144, %156 : vector<2x32xf32>
    %158 = arith.addf %153, %157 : vector<2x32xf32>
    %159 = math.tanh %158 : vector<2x32xf32>
    %160 = arith.subf %131, %159 : vector<2x32xf32>
    %161 = arith.mulf %152, %160 : vector<2x32xf32>
    %162 = arith.addf %159, %161 : vector<2x32xf32>
    %163 = arith.truncf %162 : vector<2x32xf32> to vector<2x32xbf16>
    %c8 = arith.constant 8 : index
    %c0_30 = arith.constant 0 : index
    %164 = vector.load %arg13[%c8, %c0_30] : memref<16x32xbf16, #tpu.memory_space<vmem>>, vector<2x32xbf16>
    tpu.vector_store %arg13[%c8, %c0_30], %163 {strides = array<i32>} : memref<16x32xbf16, #tpu.memory_space<vmem>>, vector<2x32xbf16>,
    %165 = vector.extract_strided_slice %8 {offsets = [10, 0], sizes = [2, 96], strides = [1, 1]} : vector<16x96xf32> to vector<2x96xf32>
    %166 = arith.truncf %162 : vector<2x32xf32> to vector<2x32xbf16>
    %cst_31 = arith.constant dense<0.000000e+00> : vector<2x96xf32>
    %167 = tpu.matmul %166, %3, %cst_31 {dimension_numbers = #tpu.dot_dimension_numbers<[1], [0], [0], [1], [0, 0, 1, 1], [], []>} : vector<2x32xbf16>, vector<32x96xbf16>, vector<2x96xf32> -> vector<2x96xf32>
    %168 = vector.extract_strided_slice %165 {offsets = [0, 0], sizes = [2, 32], strides = [1, 1]} : vector<2x96xf32> to vector<2x32xf32>
    %169 = vector.extract_strided_slice %167 {offsets = [0, 0], sizes = [2, 32], strides = [1, 1]} : vector<2x96xf32> to vector<2x32xf32>
    %170 = arith.addf %168, %169 : vector<2x32xf32>
    %171 = arith.negf %170 : vector<2x32xf32>
    %172 = math.exp %171 : vector<2x32xf32>
    %cst_32 = arith.constant 1.000000e+00 : f32
    %173 = vector.broadcast %cst_32 : f32 to vector<2x32xf32>
    %174 = arith.addf %173, %172 : vector<2x32xf32>
    %175 = arith.divf %173, %174 : vector<2x32xf32>
    %176 = vector.extract_strided_slice %165 {offsets = [0, 32], sizes = [2, 32], strides = [1, 1]} : vector<2x96xf32> to vector<2x32xf32>
    %177 = vector.extract_strided_slice %167 {offsets = [0, 32], sizes = [2, 32], strides = [1, 1]} : vector<2x96xf32> to vector<2x32xf32>
    %178 = arith.addf %176, %177 : vector<2x32xf32>
    %179 = arith.negf %178 : vector<2x32xf32>
    %180 = math.exp %179 : vector<2x32xf32>
    %cst_33 = arith.constant 1.000000e+00 : f32
    %181 = vector.broadcast %cst_33 : f32 to vector<2x32xf32>
    %182 = arith.addf %181, %180 : vector<2x32xf32>
    %183 = arith.divf %181, %182 : vector<2x32xf32>
    %184 = vector.extract_strided_slice %165 {offsets = [0, 64], sizes = [2, 32], strides = [1, 1]} : vector<2x96xf32> to vector<2x32xf32>
    %185 = vector.extract_strided_slice %167 {offsets = [0, 64], sizes = [2, 32], strides = [1, 1]} : vector<2x96xf32> to vector<2x32xf32>
    %186 = vector.broadcast %5 : vector<1x32xf32> to vector<2x32xf32>
    %187 = arith.addf %185, %186 : vector<2x32xf32>
    %188 = arith.mulf %175, %187 : vector<2x32xf32>
    %189 = arith.addf %184, %188 : vector<2x32xf32>
    %190 = math.tanh %189 : vector<2x32xf32>
    %191 = arith.subf %162, %190 : vector<2x32xf32>
    %192 = arith.mulf %183, %191 : vector<2x32xf32>
    %193 = arith.addf %190, %192 : vector<2x32xf32>
    %194 = arith.truncf %193 : vector<2x32xf32> to vector<2x32xbf16>
    %c10 = arith.constant 10 : index
    %c0_34 = arith.constant 0 : index
    %195 = vector.load %arg13[%c10, %c0_34] : memref<16x32xbf16, #tpu.memory_space<vmem>>, vector<2x32xbf16>
    tpu.vector_store %arg13[%c10, %c0_34], %194 {strides = array<i32>} : memref<16x32xbf16, #tpu.memory_space<vmem>>, vector<2x32xbf16>,
    %196 = vector.extract_strided_slice %8 {offsets = [12, 0], sizes = [2, 96], strides = [1, 1]} : vector<16x96xf32> to vector<2x96xf32>
    %197 = arith.truncf %193 : vector<2x32xf32> to vector<2x32xbf16>
    %cst_35 = arith.constant dense<0.000000e+00> : vector<2x96xf32>
    %198 = tpu.matmul %197, %3, %cst_35 {dimension_numbers = #tpu.dot_dimension_numbers<[1], [0], [0], [1], [0, 0, 1, 1], [], []>} : vector<2x32xbf16>, vector<32x96xbf16>, vector<2x96xf32> -> vector<2x96xf32>
    %199 = vector.extract_strided_slice %196 {offsets = [0, 0], sizes = [2, 32], strides = [1, 1]} : vector<2x96xf32> to vector<2x32xf32>
    %200 = vector.extract_strided_slice %198 {offsets = [0, 0], sizes = [2, 32], strides = [1, 1]} : vector<2x96xf32> to vector<2x32xf32>
    %201 = arith.addf %199, %200 : vector<2x32xf32>
    %202 = arith.negf %201 : vector<2x32xf32>
    %203 = math.exp %202 : vector<2x32xf32>
    %cst_36 = arith.constant 1.000000e+00 : f32
    %204 = vector.broadcast %cst_36 : f32 to vector<2x32xf32>
    %205 = arith.addf %204, %203 : vector<2x32xf32>
    %206 = arith.divf %204, %205 : vector<2x32xf32>
    %207 = vector.extract_strided_slice %196 {offsets = [0, 32], sizes = [2, 32], strides = [1, 1]} : vector<2x96xf32> to vector<2x32xf32>
    %208 = vector.extract_strided_slice %198 {offsets = [0, 32], sizes = [2, 32], strides = [1, 1]} : vector<2x96xf32> to vector<2x32xf32>
    %209 = arith.addf %207, %208 : vector<2x32xf32>
    %210 = arith.negf %209 : vector<2x32xf32>
    %211 = math.exp %210 : vector<2x32xf32>
    %cst_37 = arith.constant 1.000000e+00 : f32
    %212 = vector.broadcast %cst_37 : f32 to vector<2x32xf32>
    %213 = arith.addf %212, %211 : vector<2x32xf32>
    %214 = arith.divf %212, %213 : vector<2x32xf32>
    %215 = vector.extract_strided_slice %196 {offsets = [0, 64], sizes = [2, 32], strides = [1, 1]} : vector<2x96xf32> to vector<2x32xf32>
    %216 = vector.extract_strided_slice %198 {offsets = [0, 64], sizes = [2, 32], strides = [1, 1]} : vector<2x96xf32> to vector<2x32xf32>
    %217 = vector.broadcast %5 : vector<1x32xf32> to vector<2x32xf32>
    %218 = arith.addf %216, %217 : vector<2x32xf32>
    %219 = arith.mulf %206, %218 : vector<2x32xf32>
    %220 = arith.addf %215, %219 : vector<2x32xf32>
    %221 = math.tanh %220 : vector<2x32xf32>
    %222 = arith.subf %193, %221 : vector<2x32xf32>
    %223 = arith.mulf %214, %222 : vector<2x32xf32>
    %224 = arith.addf %221, %223 : vector<2x32xf32>
    %225 = arith.truncf %224 : vector<2x32xf32> to vector<2x32xbf16>
    %c12 = arith.constant 12 : index
    %c0_38 = arith.constant 0 : index
    %226 = vector.load %arg13[%c12, %c0_38] : memref<16x32xbf16, #tpu.memory_space<vmem>>, vector<2x32xbf16>
    tpu.vector_store %arg13[%c12, %c0_38], %225 {strides = array<i32>} : memref<16x32xbf16, #tpu.memory_space<vmem>>, vector<2x32xbf16>,
    %227 = vector.extract_strided_slice %8 {offsets = [14, 0], sizes = [2, 96], strides = [1, 1]} : vector<16x96xf32> to vector<2x96xf32>
    %228 = arith.truncf %224 : vector<2x32xf32> to vector<2x32xbf16>
    %cst_39 = arith.constant dense<0.000000e+00> : vector<2x96xf32>
    %229 = tpu.matmul %228, %3, %cst_39 {dimension_numbers = #tpu.dot_dimension_numbers<[1], [0], [0], [1], [0, 0, 1, 1], [], []>} : vector<2x32xbf16>, vector<32x96xbf16>, vector<2x96xf32> -> vector<2x96xf32>
    %230 = vector.extract_strided_slice %227 {offsets = [0, 0], sizes = [2, 32], strides = [1, 1]} : vector<2x96xf32> to vector<2x32xf32>
    %231 = vector.extract_strided_slice %229 {offsets = [0, 0], sizes = [2, 32], strides = [1, 1]} : vector<2x96xf32> to vector<2x32xf32>
    %232 = arith.addf %230, %231 : vector<2x32xf32>
    %233 = arith.negf %232 : vector<2x32xf32>
    %234 = math.exp %233 : vector<2x32xf32>
    %cst_40 = arith.constant 1.000000e+00 : f32
    %235 = vector.broadcast %cst_40 : f32 to vector<2x32xf32>
    %236 = arith.addf %235, %234 : vector<2x32xf32>
    %237 = arith.divf %235, %236 : vector<2x32xf32>
    %238 = vector.extract_strided_slice %227 {offsets = [0, 32], sizes = [2, 32], strides = [1, 1]} : vector<2x96xf32> to vector<2x32xf32>
    %239 = vector.extract_strided_slice %229 {offsets = [0, 32], sizes = [2, 32], strides = [1, 1]} : vector<2x96xf32> to vector<2x32xf32>
    %240 = arith.addf %238, %239 : vector<2x32xf32>
    %241 = arith.negf %240 : vector<2x32xf32>
    %242 = math.exp %241 : vector<2x32xf32>
    %cst_41 = arith.constant 1.000000e+00 : f32
    %243 = vector.broadcast %cst_41 : f32 to vector<2x32xf32>
    %244 = arith.addf %243, %242 : vector<2x32xf32>
    %245 = arith.divf %243, %244 : vector<2x32xf32>
    %246 = vector.extract_strided_slice %227 {offsets = [0, 64], sizes = [2, 32], strides = [1, 1]} : vector<2x96xf32> to vector<2x32xf32>
    %247 = vector.extract_strided_slice %229 {offsets = [0, 64], sizes = [2, 32], strides = [1, 1]} : vector<2x96xf32> to vector<2x32xf32>
    %248 = vector.broadcast %5 : vector<1x32xf32> to vector<2x32xf32>
    %249 = arith.addf %247, %248 : vector<2x32xf32>
    %250 = arith.mulf %237, %249 : vector<2x32xf32>
    %251 = arith.addf %246, %250 : vector<2x32xf32>
    %252 = math.tanh %251 : vector<2x32xf32>
    %253 = arith.subf %224, %252 : vector<2x32xf32>
    %254 = arith.mulf %245, %253 : vector<2x32xf32>
    %255 = arith.addf %252, %254 : vector<2x32xf32>
    %256 = arith.truncf %255 : vector<2x32xf32> to vector<2x32xbf16>
    %c14 = arith.constant 14 : index
    %c0_42 = arith.constant 0 : index
    %257 = vector.load %arg13[%c14, %c0_42] : memref<16x32xbf16, #tpu.memory_space<vmem>>, vector<2x32xbf16>
    tpu.vector_store %arg13[%c14, %c0_42], %256 {strides = array<i32>} : memref<16x32xbf16, #tpu.memory_space<vmem>>, vector<2x32xbf16>,
    %c0_43 = arith.constant 0 : index
    %c0_44 = arith.constant 0 : index
    %258 = vector.load %arg13[%c0_43, %c0_44] : memref<16x32xbf16, #tpu.memory_space<vmem>>, vector<16x32xbf16>
    %c0_45 = arith.constant 0 : index
    %c0_46 = arith.constant 0 : index
    %259 = vector.load %arg6[%c0_45, %c0_46] : memref<32x96xbf16, #tpu.memory_space<vmem>>, vector<32x96xbf16>
    %c0_47 = arith.constant 0 : index
    %c0_48 = arith.constant 0 : index
    %260 = vector.load %arg7[%c0_47, %c0_48] : memref<32x96xbf16, #tpu.memory_space<vmem>>, vector<32x96xbf16>
    %c0_49 = arith.constant 0 : index
    %c0_50 = arith.constant 0 : index
    %261 = vector.load %arg8[%c0_49, %c0_50] : memref<1x96xf32, #tpu.memory_space<vmem>>, vector<1x96xf32>
    %c0_51 = arith.constant 0 : index
    %c0_52 = arith.constant 0 : index
    %262 = vector.load %arg9[%c0_51, %c0_52] : memref<1x32xf32, #tpu.memory_space<vmem>>, vector<1x32xf32>
    %cst_53 = arith.constant dense<0.000000e+00> : vector<16x96xf32>
    %263 = tpu.matmul %258, %259, %cst_53 {dimension_numbers = #tpu.dot_dimension_numbers<[1], [0], [0], [1], [0, 0, 1, 1], [], []>} : vector<16x32xbf16>, vector<32x96xbf16>, vector<16x96xf32> -> vector<16x96xf32>
    %264 = vector.broadcast %261 : vector<1x96xf32> to vector<16x96xf32>
    %265 = arith.addf %263, %264 : vector<16x96xf32>
    %cst_54 = arith.constant 0.000000e+00 : f32
    %266 = vector.broadcast %cst_54 : f32 to vector<2x32xf32>
    %267 = vector.extract_strided_slice %265 {offsets = [0, 0], sizes = [2, 96], strides = [1, 1]} : vector<16x96xf32> to vector<2x96xf32>
    %268 = arith.truncf %266 : vector<2x32xf32> to vector<2x32xbf16>
    %cst_55 = arith.constant dense<0.000000e+00> : vector<2x96xf32>
    %269 = tpu.matmul %268, %260, %cst_55 {dimension_numbers = #tpu.dot_dimension_numbers<[1], [0], [0], [1], [0, 0, 1, 1], [], []>} : vector<2x32xbf16>, vector<32x96xbf16>, vector<2x96xf32> -> vector<2x96xf32>
    %270 = vector.extract_strided_slice %267 {offsets = [0, 0], sizes = [2, 32], strides = [1, 1]} : vector<2x96xf32> to vector<2x32xf32>
    %271 = vector.extract_strided_slice %269 {offsets = [0, 0], sizes = [2, 32], strides = [1, 1]} : vector<2x96xf32> to vector<2x32xf32>
    %272 = arith.addf %270, %271 : vector<2x32xf32>
    %273 = arith.negf %272 : vector<2x32xf32>
    %274 = math.exp %273 : vector<2x32xf32>
    %cst_56 = arith.constant 1.000000e+00 : f32
    %275 = vector.broadcast %cst_56 : f32 to vector<2x32xf32>
    %276 = arith.addf %275, %274 : vector<2x32xf32>
    %277 = arith.divf %275, %276 : vector<2x32xf32>
    %278 = vector.extract_strided_slice %267 {offsets = [0, 32], sizes = [2, 32], strides = [1, 1]} : vector<2x96xf32> to vector<2x32xf32>
    %279 = vector.extract_strided_slice %269 {offsets = [0, 32], sizes = [2, 32], strides = [1, 1]} : vector<2x96xf32> to vector<2x32xf32>
    %280 = arith.addf %278, %279 : vector<2x32xf32>
    %281 = arith.negf %280 : vector<2x32xf32>
    %282 = math.exp %281 : vector<2x32xf32>
    %cst_57 = arith.constant 1.000000e+00 : f32
    %283 = vector.broadcast %cst_57 : f32 to vector<2x32xf32>
    %284 = arith.addf %283, %282 : vector<2x32xf32>
    %285 = arith.divf %283, %284 : vector<2x32xf32>
    %286 = vector.extract_strided_slice %267 {offsets = [0, 64], sizes = [2, 32], strides = [1, 1]} : vector<2x96xf32> to vector<2x32xf32>
    %287 = vector.extract_strided_slice %269 {offsets = [0, 64], sizes = [2, 32], strides = [1, 1]} : vector<2x96xf32> to vector<2x32xf32>
    %288 = vector.broadcast %262 : vector<1x32xf32> to vector<2x32xf32>
    %289 = arith.addf %287, %288 : vector<2x32xf32>
    %290 = arith.mulf %277, %289 : vector<2x32xf32>
    %291 = arith.addf %286, %290 : vector<2x32xf32>
    %292 = math.tanh %291 : vector<2x32xf32>
    %293 = arith.subf %266, %292 : vector<2x32xf32>
    %294 = arith.mulf %285, %293 : vector<2x32xf32>
    %295 = arith.addf %292, %294 : vector<2x32xf32>
    %296 = vector.extract_strided_slice %265 {offsets = [2, 0], sizes = [2, 96], strides = [1, 1]} : vector<16x96xf32> to vector<2x96xf32>
    %297 = arith.truncf %295 : vector<2x32xf32> to vector<2x32xbf16>
    %cst_58 = arith.constant dense<0.000000e+00> : vector<2x96xf32>
    %298 = tpu.matmul %297, %260, %cst_58 {dimension_numbers = #tpu.dot_dimension_numbers<[1], [0], [0], [1], [0, 0, 1, 1], [], []>} : vector<2x32xbf16>, vector<32x96xbf16>, vector<2x96xf32> -> vector<2x96xf32>
    %299 = vector.extract_strided_slice %296 {offsets = [0, 0], sizes = [2, 32], strides = [1, 1]} : vector<2x96xf32> to vector<2x32xf32>
    %300 = vector.extract_strided_slice %298 {offsets = [0, 0], sizes = [2, 32], strides = [1, 1]} : vector<2x96xf32> to vector<2x32xf32>
    %301 = arith.addf %299, %300 : vector<2x32xf32>
    %302 = arith.negf %301 : vector<2x32xf32>
    %303 = math.exp %302 : vector<2x32xf32>
    %cst_59 = arith.constant 1.000000e+00 : f32
    %304 = vector.broadcast %cst_59 : f32 to vector<2x32xf32>
    %305 = arith.addf %304, %303 : vector<2x32xf32>
    %306 = arith.divf %304, %305 : vector<2x32xf32>
    %307 = vector.extract_strided_slice %296 {offsets = [0, 32], sizes = [2, 32], strides = [1, 1]} : vector<2x96xf32> to vector<2x32xf32>
    %308 = vector.extract_strided_slice %298 {offsets = [0, 32], sizes = [2, 32], strides = [1, 1]} : vector<2x96xf32> to vector<2x32xf32>
    %309 = arith.addf %307, %308 : vector<2x32xf32>
    %310 = arith.negf %309 : vector<2x32xf32>
    %311 = math.exp %310 : vector<2x32xf32>
    %cst_60 = arith.constant 1.000000e+00 : f32
    %312 = vector.broadcast %cst_60 : f32 to vector<2x32xf32>
    %313 = arith.addf %312, %311 : vector<2x32xf32>
    %314 = arith.divf %312, %313 : vector<2x32xf32>
    %315 = vector.extract_strided_slice %296 {offsets = [0, 64], sizes = [2, 32], strides = [1, 1]} : vector<2x96xf32> to vector<2x32xf32>
    %316 = vector.extract_strided_slice %298 {offsets = [0, 64], sizes = [2, 32], strides = [1, 1]} : vector<2x96xf32> to vector<2x32xf32>
    %317 = vector.broadcast %262 : vector<1x32xf32> to vector<2x32xf32>
    %318 = arith.addf %316, %317 : vector<2x32xf32>
    %319 = arith.mulf %306, %318 : vector<2x32xf32>
    %320 = arith.addf %315, %319 : vector<2x32xf32>
    %321 = math.tanh %320 : vector<2x32xf32>
    %322 = arith.subf %295, %321 : vector<2x32xf32>
    %323 = arith.mulf %314, %322 : vector<2x32xf32>
    %324 = arith.addf %321, %323 : vector<2x32xf32>
    %325 = vector.extract_strided_slice %265 {offsets = [4, 0], sizes = [2, 96], strides = [1, 1]} : vector<16x96xf32> to vector<2x96xf32>
    %326 = arith.truncf %324 : vector<2x32xf32> to vector<2x32xbf16>
    %cst_61 = arith.constant dense<0.000000e+00> : vector<2x96xf32>
    %327 = tpu.matmul %326, %260, %cst_61 {dimension_numbers = #tpu.dot_dimension_numbers<[1], [0], [0], [1], [0, 0, 1, 1], [], []>} : vector<2x32xbf16>, vector<32x96xbf16>, vector<2x96xf32> -> vector<2x96xf32>
    %328 = vector.extract_strided_slice %325 {offsets = [0, 0], sizes = [2, 32], strides = [1, 1]} : vector<2x96xf32> to vector<2x32xf32>
    %329 = vector.extract_strided_slice %327 {offsets = [0, 0], sizes = [2, 32], strides = [1, 1]} : vector<2x96xf32> to vector<2x32xf32>
    %330 = arith.addf %328, %329 : vector<2x32xf32>
    %331 = arith.negf %330 : vector<2x32xf32>
    %332 = math.exp %331 : vector<2x32xf32>
    %cst_62 = arith.constant 1.000000e+00 : f32
    %333 = vector.broadcast %cst_62 : f32 to vector<2x32xf32>
    %334 = arith.addf %333, %332 : vector<2x32xf32>
    %335 = arith.divf %333, %334 : vector<2x32xf32>
    %336 = vector.extract_strided_slice %325 {offsets = [0, 32], sizes = [2, 32], strides = [1, 1]} : vector<2x96xf32> to vector<2x32xf32>
    %337 = vector.extract_strided_slice %327 {offsets = [0, 32], sizes = [2, 32], strides = [1, 1]} : vector<2x96xf32> to vector<2x32xf32>
    %338 = arith.addf %336, %337 : vector<2x32xf32>
    %339 = arith.negf %338 : vector<2x32xf32>
    %340 = math.exp %339 : vector<2x32xf32>
    %cst_63 = arith.constant 1.000000e+00 : f32
    %341 = vector.broadcast %cst_63 : f32 to vector<2x32xf32>
    %342 = arith.addf %341, %340 : vector<2x32xf32>
    %343 = arith.divf %341, %342 : vector<2x32xf32>
    %344 = vector.extract_strided_slice %325 {offsets = [0, 64], sizes = [2, 32], strides = [1, 1]} : vector<2x96xf32> to vector<2x32xf32>
    %345 = vector.extract_strided_slice %327 {offsets = [0, 64], sizes = [2, 32], strides = [1, 1]} : vector<2x96xf32> to vector<2x32xf32>
    %346 = vector.broadcast %262 : vector<1x32xf32> to vector<2x32xf32>
    %347 = arith.addf %345, %346 : vector<2x32xf32>
    %348 = arith.mulf %335, %347 : vector<2x32xf32>
    %349 = arith.addf %344, %348 : vector<2x32xf32>
    %350 = math.tanh %349 : vector<2x32xf32>
    %351 = arith.subf %324, %350 : vector<2x32xf32>
    %352 = arith.mulf %343, %351 : vector<2x32xf32>
    %353 = arith.addf %350, %352 : vector<2x32xf32>
    %354 = vector.extract_strided_slice %265 {offsets = [6, 0], sizes = [2, 96], strides = [1, 1]} : vector<16x96xf32> to vector<2x96xf32>
    %355 = arith.truncf %353 : vector<2x32xf32> to vector<2x32xbf16>
    %cst_64 = arith.constant dense<0.000000e+00> : vector<2x96xf32>
    %356 = tpu.matmul %355, %260, %cst_64 {dimension_numbers = #tpu.dot_dimension_numbers<[1], [0], [0], [1], [0, 0, 1, 1], [], []>} : vector<2x32xbf16>, vector<32x96xbf16>, vector<2x96xf32> -> vector<2x96xf32>
    %357 = vector.extract_strided_slice %354 {offsets = [0, 0], sizes = [2, 32], strides = [1, 1]} : vector<2x96xf32> to vector<2x32xf32>
    %358 = vector.extract_strided_slice %356 {offsets = [0, 0], sizes = [2, 32], strides = [1, 1]} : vector<2x96xf32> to vector<2x32xf32>
    %359 = arith.addf %357, %358 : vector<2x32xf32>
    %360 = arith.negf %359 : vector<2x32xf32>
    %361 = math.exp %360 : vector<2x32xf32>
    %cst_65 = arith.constant 1.000000e+00 : f32
    %362 = vector.broadcast %cst_65 : f32 to vector<2x32xf32>
    %363 = arith.addf %362, %361 : vector<2x32xf32>
    %364 = arith.divf %362, %363 : vector<2x32xf32>
    %365 = vector.extract_strided_slice %354 {offsets = [0, 32], sizes = [2, 32], strides = [1, 1]} : vector<2x96xf32> to vector<2x32xf32>
    %366 = vector.extract_strided_slice %356 {offsets = [0, 32], sizes = [2, 32], strides = [1, 1]} : vector<2x96xf32> to vector<2x32xf32>
    %367 = arith.addf %365, %366 : vector<2x32xf32>
    %368 = arith.negf %367 : vector<2x32xf32>
    %369 = math.exp %368 : vector<2x32xf32>
    %cst_66 = arith.constant 1.000000e+00 : f32
    %370 = vector.broadcast %cst_66 : f32 to vector<2x32xf32>
    %371 = arith.addf %370, %369 : vector<2x32xf32>
    %372 = arith.divf %370, %371 : vector<2x32xf32>
    %373 = vector.extract_strided_slice %354 {offsets = [0, 64], sizes = [2, 32], strides = [1, 1]} : vector<2x96xf32> to vector<2x32xf32>
    %374 = vector.extract_strided_slice %356 {offsets = [0, 64], sizes = [2, 32], strides = [1, 1]} : vector<2x96xf32> to vector<2x32xf32>
    %375 = vector.broadcast %262 : vector<1x32xf32> to vector<2x32xf32>
    %376 = arith.addf %374, %375 : vector<2x32xf32>
    %377 = arith.mulf %364, %376 : vector<2x32xf32>
    %378 = arith.addf %373, %377 : vector<2x32xf32>
    %379 = math.tanh %378 : vector<2x32xf32>
    %380 = arith.subf %353, %379 : vector<2x32xf32>
    %381 = arith.mulf %372, %380 : vector<2x32xf32>
    %382 = arith.addf %379, %381 : vector<2x32xf32>
    %383 = vector.extract_strided_slice %265 {offsets = [8, 0], sizes = [2, 96], strides = [1, 1]} : vector<16x96xf32> to vector<2x96xf32>
    %384 = arith.truncf %382 : vector<2x32xf32> to vector<2x32xbf16>
    %cst_67 = arith.constant dense<0.000000e+00> : vector<2x96xf32>
    %385 = tpu.matmul %384, %260, %cst_67 {dimension_numbers = #tpu.dot_dimension_numbers<[1], [0], [0], [1], [0, 0, 1, 1], [], []>} : vector<2x32xbf16>, vector<32x96xbf16>, vector<2x96xf32> -> vector<2x96xf32>
    %386 = vector.extract_strided_slice %383 {offsets = [0, 0], sizes = [2, 32], strides = [1, 1]} : vector<2x96xf32> to vector<2x32xf32>
    %387 = vector.extract_strided_slice %385 {offsets = [0, 0], sizes = [2, 32], strides = [1, 1]} : vector<2x96xf32> to vector<2x32xf32>
    %388 = arith.addf %386, %387 : vector<2x32xf32>
    %389 = arith.negf %388 : vector<2x32xf32>
    %390 = math.exp %389 : vector<2x32xf32>
    %cst_68 = arith.constant 1.000000e+00 : f32
    %391 = vector.broadcast %cst_68 : f32 to vector<2x32xf32>
    %392 = arith.addf %391, %390 : vector<2x32xf32>
    %393 = arith.divf %391, %392 : vector<2x32xf32>
    %394 = vector.extract_strided_slice %383 {offsets = [0, 32], sizes = [2, 32], strides = [1, 1]} : vector<2x96xf32> to vector<2x32xf32>
    %395 = vector.extract_strided_slice %385 {offsets = [0, 32], sizes = [2, 32], strides = [1, 1]} : vector<2x96xf32> to vector<2x32xf32>
    %396 = arith.addf %394, %395 : vector<2x32xf32>
    %397 = arith.negf %396 : vector<2x32xf32>
    %398 = math.exp %397 : vector<2x32xf32>
    %cst_69 = arith.constant 1.000000e+00 : f32
    %399 = vector.broadcast %cst_69 : f32 to vector<2x32xf32>
    %400 = arith.addf %399, %398 : vector<2x32xf32>
    %401 = arith.divf %399, %400 : vector<2x32xf32>
    %402 = vector.extract_strided_slice %383 {offsets = [0, 64], sizes = [2, 32], strides = [1, 1]} : vector<2x96xf32> to vector<2x32xf32>
    %403 = vector.extract_strided_slice %385 {offsets = [0, 64], sizes = [2, 32], strides = [1, 1]} : vector<2x96xf32> to vector<2x32xf32>
    %404 = vector.broadcast %262 : vector<1x32xf32> to vector<2x32xf32>
    %405 = arith.addf %403, %404 : vector<2x32xf32>
    %406 = arith.mulf %393, %405 : vector<2x32xf32>
    %407 = arith.addf %402, %406 : vector<2x32xf32>
    %408 = math.tanh %407 : vector<2x32xf32>
    %409 = arith.subf %382, %408 : vector<2x32xf32>
    %410 = arith.mulf %401, %409 : vector<2x32xf32>
    %411 = arith.addf %408, %410 : vector<2x32xf32>
    %412 = vector.extract_strided_slice %265 {offsets = [10, 0], sizes = [2, 96], strides = [1, 1]} : vector<16x96xf32> to vector<2x96xf32>
    %413 = arith.truncf %411 : vector<2x32xf32> to vector<2x32xbf16>
    %cst_70 = arith.constant dense<0.000000e+00> : vector<2x96xf32>
    %414 = tpu.matmul %413, %260, %cst_70 {dimension_numbers = #tpu.dot_dimension_numbers<[1], [0], [0], [1], [0, 0, 1, 1], [], []>} : vector<2x32xbf16>, vector<32x96xbf16>, vector<2x96xf32> -> vector<2x96xf32>
    %415 = vector.extract_strided_slice %412 {offsets = [0, 0], sizes = [2, 32], strides = [1, 1]} : vector<2x96xf32> to vector<2x32xf32>
    %416 = vector.extract_strided_slice %414 {offsets = [0, 0], sizes = [2, 32], strides = [1, 1]} : vector<2x96xf32> to vector<2x32xf32>
    %417 = arith.addf %415, %416 : vector<2x32xf32>
    %418 = arith.negf %417 : vector<2x32xf32>
    %419 = math.exp %418 : vector<2x32xf32>
    %cst_71 = arith.constant 1.000000e+00 : f32
    %420 = vector.broadcast %cst_71 : f32 to vector<2x32xf32>
    %421 = arith.addf %420, %419 : vector<2x32xf32>
    %422 = arith.divf %420, %421 : vector<2x32xf32>
    %423 = vector.extract_strided_slice %412 {offsets = [0, 32], sizes = [2, 32], strides = [1, 1]} : vector<2x96xf32> to vector<2x32xf32>
    %424 = vector.extract_strided_slice %414 {offsets = [0, 32], sizes = [2, 32], strides = [1, 1]} : vector<2x96xf32> to vector<2x32xf32>
    %425 = arith.addf %423, %424 : vector<2x32xf32>
    %426 = arith.negf %425 : vector<2x32xf32>
    %427 = math.exp %426 : vector<2x32xf32>
    %cst_72 = arith.constant 1.000000e+00 : f32
    %428 = vector.broadcast %cst_72 : f32 to vector<2x32xf32>
    %429 = arith.addf %428, %427 : vector<2x32xf32>
    %430 = arith.divf %428, %429 : vector<2x32xf32>
    %431 = vector.extract_strided_slice %412 {offsets = [0, 64], sizes = [2, 32], strides = [1, 1]} : vector<2x96xf32> to vector<2x32xf32>
    %432 = vector.extract_strided_slice %414 {offsets = [0, 64], sizes = [2, 32], strides = [1, 1]} : vector<2x96xf32> to vector<2x32xf32>
    %433 = vector.broadcast %262 : vector<1x32xf32> to vector<2x32xf32>
    %434 = arith.addf %432, %433 : vector<2x32xf32>
    %435 = arith.mulf %422, %434 : vector<2x32xf32>
    %436 = arith.addf %431, %435 : vector<2x32xf32>
    %437 = math.tanh %436 : vector<2x32xf32>
    %438 = arith.subf %411, %437 : vector<2x32xf32>
    %439 = arith.mulf %430, %438 : vector<2x32xf32>
    %440 = arith.addf %437, %439 : vector<2x32xf32>
    %441 = vector.extract_strided_slice %265 {offsets = [12, 0], sizes = [2, 96], strides = [1, 1]} : vector<16x96xf32> to vector<2x96xf32>
    %442 = arith.truncf %440 : vector<2x32xf32> to vector<2x32xbf16>
    %cst_73 = arith.constant dense<0.000000e+00> : vector<2x96xf32>
    %443 = tpu.matmul %442, %260, %cst_73 {dimension_numbers = #tpu.dot_dimension_numbers<[1], [0], [0], [1], [0, 0, 1, 1], [], []>} : vector<2x32xbf16>, vector<32x96xbf16>, vector<2x96xf32> -> vector<2x96xf32>
    %444 = vector.extract_strided_slice %441 {offsets = [0, 0], sizes = [2, 32], strides = [1, 1]} : vector<2x96xf32> to vector<2x32xf32>
    %445 = vector.extract_strided_slice %443 {offsets = [0, 0], sizes = [2, 32], strides = [1, 1]} : vector<2x96xf32> to vector<2x32xf32>
    %446 = arith.addf %444, %445 : vector<2x32xf32>
    %447 = arith.negf %446 : vector<2x32xf32>
    %448 = math.exp %447 : vector<2x32xf32>
    %cst_74 = arith.constant 1.000000e+00 : f32
    %449 = vector.broadcast %cst_74 : f32 to vector<2x32xf32>
    %450 = arith.addf %449, %448 : vector<2x32xf32>
    %451 = arith.divf %449, %450 : vector<2x32xf32>
    %452 = vector.extract_strided_slice %441 {offsets = [0, 32], sizes = [2, 32], strides = [1, 1]} : vector<2x96xf32> to vector<2x32xf32>
    %453 = vector.extract_strided_slice %443 {offsets = [0, 32], sizes = [2, 32], strides = [1, 1]} : vector<2x96xf32> to vector<2x32xf32>
    %454 = arith.addf %452, %453 : vector<2x32xf32>
    %455 = arith.negf %454 : vector<2x32xf32>
    %456 = math.exp %455 : vector<2x32xf32>
    %cst_75 = arith.constant 1.000000e+00 : f32
    %457 = vector.broadcast %cst_75 : f32 to vector<2x32xf32>
    %458 = arith.addf %457, %456 : vector<2x32xf32>
    %459 = arith.divf %457, %458 : vector<2x32xf32>
    %460 = vector.extract_strided_slice %441 {offsets = [0, 64], sizes = [2, 32], strides = [1, 1]} : vector<2x96xf32> to vector<2x32xf32>
    %461 = vector.extract_strided_slice %443 {offsets = [0, 64], sizes = [2, 32], strides = [1, 1]} : vector<2x96xf32> to vector<2x32xf32>
    %462 = vector.broadcast %262 : vector<1x32xf32> to vector<2x32xf32>
    %463 = arith.addf %461, %462 : vector<2x32xf32>
    %464 = arith.mulf %451, %463 : vector<2x32xf32>
    %465 = arith.addf %460, %464 : vector<2x32xf32>
    %466 = math.tanh %465 : vector<2x32xf32>
    %467 = arith.subf %440, %466 : vector<2x32xf32>
    %468 = arith.mulf %459, %467 : vector<2x32xf32>
    %469 = arith.addf %466, %468 : vector<2x32xf32>
    %470 = vector.extract_strided_slice %265 {offsets = [14, 0], sizes = [2, 96], strides = [1, 1]} : vector<16x96xf32> to vector<2x96xf32>
    %471 = arith.truncf %469 : vector<2x32xf32> to vector<2x32xbf16>
    %cst_76 = arith.constant dense<0.000000e+00> : vector<2x96xf32>
    %472 = tpu.matmul %471, %260, %cst_76 {dimension_numbers = #tpu.dot_dimension_numbers<[1], [0], [0], [1], [0, 0, 1, 1], [], []>} : vector<2x32xbf16>, vector<32x96xbf16>, vector<2x96xf32> -> vector<2x96xf32>
    %473 = vector.extract_strided_slice %470 {offsets = [0, 0], sizes = [2, 32], strides = [1, 1]} : vector<2x96xf32> to vector<2x32xf32>
    %474 = vector.extract_strided_slice %472 {offsets = [0, 0], sizes = [2, 32], strides = [1, 1]} : vector<2x96xf32> to vector<2x32xf32>
    %475 = arith.addf %473, %474 : vector<2x32xf32>
    %476 = arith.negf %475 : vector<2x32xf32>
    %477 = math.exp %476 : vector<2x32xf32>
    %cst_77 = arith.constant 1.000000e+00 : f32
    %478 = vector.broadcast %cst_77 : f32 to vector<2x32xf32>
    %479 = arith.addf %478, %477 : vector<2x32xf32>
    %480 = arith.divf %478, %479 : vector<2x32xf32>
    %481 = vector.extract_strided_slice %470 {offsets = [0, 32], sizes = [2, 32], strides = [1, 1]} : vector<2x96xf32> to vector<2x32xf32>
    %482 = vector.extract_strided_slice %472 {offsets = [0, 32], sizes = [2, 32], strides = [1, 1]} : vector<2x96xf32> to vector<2x32xf32>
    %483 = arith.addf %481, %482 : vector<2x32xf32>
    %484 = arith.negf %483 : vector<2x32xf32>
    %485 = math.exp %484 : vector<2x32xf32>
    %cst_78 = arith.constant 1.000000e+00 : f32
    %486 = vector.broadcast %cst_78 : f32 to vector<2x32xf32>
    %487 = arith.addf %486, %485 : vector<2x32xf32>
    %488 = arith.divf %486, %487 : vector<2x32xf32>
    %489 = vector.extract_strided_slice %470 {offsets = [0, 64], sizes = [2, 32], strides = [1, 1]} : vector<2x96xf32> to vector<2x32xf32>
    %490 = vector.extract_strided_slice %472 {offsets = [0, 64], sizes = [2, 32], strides = [1, 1]} : vector<2x96xf32> to vector<2x32xf32>
    %491 = vector.broadcast %262 : vector<1x32xf32> to vector<2x32xf32>
    %492 = arith.addf %490, %491 : vector<2x32xf32>
    %493 = arith.mulf %480, %492 : vector<2x32xf32>
    %494 = arith.addf %489, %493 : vector<2x32xf32>
    %495 = math.tanh %494 : vector<2x32xf32>
    %496 = arith.subf %469, %495 : vector<2x32xf32>
    %497 = arith.mulf %488, %496 : vector<2x32xf32>
    %498 = arith.addf %495, %497 : vector<2x32xf32>
    %499 = arith.truncf %498 : vector<2x32xf32> to vector<2x32xbf16>
    %c0_79 = arith.constant 0 : index
    %c0_80 = arith.constant 0 : index
    %500 = vector.load %arg10[%c0_79, %c0_80] : memref<32x32xbf16, #tpu.memory_space<vmem>>, vector<32x32xbf16>
    %cst_81 = arith.constant dense<0.000000e+00> : vector<2x32xf32>
    %501 = tpu.matmul %499, %500, %cst_81 {dimension_numbers = #tpu.dot_dimension_numbers<[1], [0], [0], [1], [0, 0, 1, 1], [], []>} : vector<2x32xbf16>, vector<32x32xbf16>, vector<2x32xf32> -> vector<2x32xf32>
    %c0_82 = arith.constant 0 : index
    %c0_83 = arith.constant 0 : index
    %502 = vector.load %arg11[%c0_82, %c0_83] : memref<1x32xf32, #tpu.memory_space<vmem>>, vector<1x32xf32>
    %503 = vector.broadcast %502 : vector<1x32xf32> to vector<2x32xf32>
    %504 = arith.addf %501, %503 : vector<2x32xf32>
    %c0_84 = arith.constant 0 : index
    %c0_85 = arith.constant 0 : index
    %505 = vector.load %arg12[%c0_84, %c0_85] : memref<2x32xf32, #tpu.memory_space<vmem>>, vector<2x32xf32>
    tpu.vector_store %arg12[%c0_84, %c0_85], %504 {strides = array<i32>} : memref<2x32xf32, #tpu.memory_space<vmem>>, vector<2x32xf32>,
    return
  }
  func.func @transform_0(%arg0: i32) -> (i32, i32) {
    %c0_i32 = arith.constant 0 : i32
    %c0_i32_0 = arith.constant 0 : i32
    %c0_i32_1 = arith.constant 0 : i32
    return %c0_i32, %c0_i32_0 : i32, i32
  }
  func.func @transform_1(%arg0: i32) -> (i32, i32) {
    %c0_i32 = arith.constant 0 : i32
    %c0_i32_0 = arith.constant 0 : i32
    %c0_i32_1 = arith.constant 0 : i32
    return %c0_i32, %c0_i32_0 : i32, i32
  }
  func.func @transform_2(%arg0: i32) -> (i32, i32) {
    %c0_i32 = arith.constant 0 : i32
    %c0_i32_0 = arith.constant 0 : i32
    %c0_i32_1 = arith.constant 0 : i32
    return %c0_i32, %c0_i32_0 : i32, i32
  }
  func.func @transform_3(%arg0: i32) -> (i32, i32) {
    %c0_i32 = arith.constant 0 : i32
    %c0_i32_0 = arith.constant 0 : i32
    %c0_i32_1 = arith.constant 0 : i32
    return %c0_i32, %c0_i32_0 : i32, i32
  }
  func.func @transform_4(%arg0: i32) -> (i32, i32) {
    %c0_i32 = arith.constant 0 : i32
    %c0_i32_0 = arith.constant 0 : i32
    %c0_i32_1 = arith.constant 0 : i32
    return %c0_i32, %c0_i32_0 : i32, i32
  }
  func.func @transform_5(%arg0: i32) -> (i32, i32) {
    %c0_i32 = arith.constant 0 : i32
    %c0_i32_0 = arith.constant 0 : i32
    %c0_i32_1 = arith.constant 0 : i32
    return %c0_i32, %c0_i32_0 : i32, i32
  }
  func.func @transform_6(%arg0: i32) -> (i32, i32) {
    %c0_i32 = arith.constant 0 : i32
    %c0_i32_0 = arith.constant 0 : i32
    %c0_i32_1 = arith.constant 0 : i32
    return %c0_i32, %c0_i32_0 : i32, i32
  }
  func.func @transform_7(%arg0: i32) -> (i32, i32) {
    %c0_i32 = arith.constant 0 : i32
    %c0_i32_0 = arith.constant 0 : i32
    %c0_i32_1 = arith.constant 0 : i32
    return %c0_i32, %c0_i32_0 : i32, i32
  }
  func.func @transform_8(%arg0: i32) -> (i32, i32) {
    %c0_i32 = arith.constant 0 : i32
    %c0_i32_0 = arith.constant 0 : i32
    %c0_i32_1 = arith.constant 0 : i32
    return %c0_i32, %c0_i32_0 : i32, i32
  }
  func.func @transform_9(%arg0: i32) -> (i32, i32) {
    %c0_i32 = arith.constant 0 : i32
    %c0_i32_0 = arith.constant 0 : i32
    %c0_i32_1 = arith.constant 0 : i32
    return %c0_i32, %c0_i32_0 : i32, i32
  }
  func.func @transform_10(%arg0: i32) -> (i32, i32) {
    %c0_i32 = arith.constant 0 : i32
    %c0_i32_0 = arith.constant 0 : i32
    %c0_i32_1 = arith.constant 0 : i32
    return %c0_i32, %c0_i32_0 : i32, i32
  }
  func.func @transform_11(%arg0: i32) -> (i32, i32) {
    %c0_i32 = arith.constant 0 : i32
    %c0_i32_0 = arith.constant 0 : i32
    %c0_i32_1 = arith.constant 0 : i32
    return %c0_i32, %c0_i32_0 : i32, i32
  }
}

</mosaic_0001>

<bundles_post_ra>
// kernel: tpu_custom_call.1
= control target key start
LH: loop header
LB: loop body
LE: loop exit
PB: predicated region body
PF: predicated region fallthrough
CT: control target
= control target key end

     0   :  { %16 = vsyncpa [#allocation4], 0  ;;  %s2870_s0 = inlined_call_operand.hbm [shape: f32[16,16], index: 0, kind: input, shape index: {}]   ;;  %s2871_s1 = inlined_call_operand.hbm [shape: bf16[16,96], index: 1, kind: input, shape index: {}]   ;;  %s2872_s2 = inlined_call_operand.hbm [shape: bf16[32,96], index: 2, kind: input, shape index: {}]   ;;  %s2873_s3 = inlined_call_operand.hbm [shape: f32[1,96], index: 3, kind: input, shape index: {}]   ;;  %s2874_s4 = inlined_call_operand.hbm [shape: f32[1,32], index: 4, kind: input, shape index: {}]   ;;  %s2875_s5 = inlined_call_operand.hbm [shape: bf16[32,96], index: 5, kind: input, shape index: {}]   ;;  %s2876_s6 = inlined_call_operand.hbm [shape: bf16[32,96], index: 6, kind: input, shape index: {}]   ;;  %s2877_s7 = inlined_call_operand.hbm [shape: f32[1,96], index: 7, kind: input, shape index: {}]   ;;  %s2878_s8 = inlined_call_operand.hbm [shape: f32[1,32], index: 8, kind: input, shape index: {}]   ;;  %s2879_s9 = inlined_call_operand.vmem [shape: bf16[32,32], index: 9, kind: input, shape index: {}]   ;;  %s2880_s10 = inlined_call_operand.vmem [shape: f32[1,32], index: 10, kind: input, shape index: {}]   ;;  %s2881_s11 = inlined_call_operand.hbm [shape: f32[2,32], index: 11, kind: output, shape index: {}]  }
   0x1   :  { %17 = vsyncpa [#allocation7], 0 }
   0x2   :  { %18 = vsyncpa [#allocation10], 0 }
   0x3   :  { %19 = vsyncpa [#allocation13], 0 }
   0x4   :  { %20 = vsyncpa [#allocation16], 0 }
   0x5   :  { %21 = vsyncpa [#allocation5], 0  ;;  %s2430_s17 = smov [#allocation6]  }
   0x6   :  { %s39_s18 = sshll.u32 %s2430_s17, 4  ;;  %s40_s18 = int_to_ptr.vmem [resolvable:$true] %s39_s18 }
   0x7   :  { %s2226_s19 = scalar_lea.vmem %s40_s18, 128  ;;  %p2231_p1 = scmp.lt.s32.totalorder %s40_s18, %s40_s18 }
   0x8   :  { %p2227_p0 = scmp.ne.s32.totalorder %s40_s18, %s2226_s19  ;;  %p2232_p2 = scmp.lt.s32.totalorder %s2226_s19, %s2226_s19 }
   0xa   :  { %p2233_p3 = por %p2232_p2, %p2231_p1 }
   0xc   :  { %p2234_p4 = pnand %p2233_p3, %p2227_p0 }
   0xe   :  { %2237 = shalt.err (!%p2234_p4)
}
   0xf   :  { %s2431_s20 = smov 64   ;;  %s2432_s21 = smov 4  }
  0x10   :  { %45 = dma.hbm_to_vmem [thread:$0]  %s2871_s1, 128, %s40_s18, [#allocation7], %s2431_s20, %s2431_s20, %s2432_s21  }
  0x11   :  { %s2433_s24 = smov [#allocation9]   ;;  %s2434_s26 = smov [#allocation12]  }
  0x12   :  { %s64_s25 = sshll.u32 %s2433_s24, 4  ;;  %s83_s27 = sshll.u32 %s2434_s26, 4  ;;  %s65_s25 = int_to_ptr.vmem [resolvable:$true] %s64_s25  ;;  %s84_s27 = int_to_ptr.vmem [resolvable:$true] %s83_s27 }
  0x13   :  { %s2246_s28 = scalar_lea.vmem %s65_s25, 16  ;;  %s2250_s29 = scalar_lea.vmem %s65_s25, 32 }
  0x14   :  { %p2247_p5 = scmp.ne.s32.totalorder %s65_s25, %s2246_s28  ;;  %p2251_p6 = scmp.lt.s32.totalorder %s65_s25, %s65_s25 }
  0x15   :  { %p2252_p7 = scmp.lt.s32.totalorder %s2250_s29, %s2246_s28 }
  0x17   :  { %p2253_p8 = por %p2252_p7, %p2251_p6 }
  0x19   :  { %p2254_p9 = pnand %p2253_p8, %p2247_p5 }
  0x1b   :  { %2257 = shalt.err (!%p2254_p9)
}
  0x1c   :  { %67 = dma.hbm_to_vmem [thread:$0]  %s2873_s3, 16, %s65_s25, [#allocation10]  }
  0x1d   :  { %s2266_s13 = scalar_lea.vmem %s84_s27, 256  ;;  %p2271_p11 = scmp.lt.s32.totalorder %s84_s27, %s84_s27 }
  0x1e   :  { %p2267_p10 = scmp.ne.s32.totalorder %s84_s27, %s2266_s13  ;;  %p2272_p12 = scmp.lt.s32.totalorder %s2266_s13, %s2266_s13 }
  0x20   :  { %p2273_p13 = por %p2272_p12, %p2271_p11 }
  0x22   :  { %p2274_p0 = pnand %p2273_p13, %p2267_p10 }
  0x24   :  { %2277 = shalt.err (!%p2274_p0)
}
  0x25   :  { %89 = dma.hbm_to_vmem [thread:$0]  %s2875_s5, 256, %s84_s27, [#allocation13], %s2431_s20, %s2431_s20, %s2432_s21  }
  0x26   :  { %s2435_s15 = smov [#allocation15]   ;;  %s2436_s17 = smov [#allocation3]  }
  0x27   :  { %s108_s16 = sshll.u32 %s2435_s15, 4  ;;  %s27_s3 = sshll.u32 %s2436_s17, 4  ;;  %s109_s16 = int_to_ptr.vmem [resolvable:$true] %s108_s16  ;;  %s28_s3 = int_to_ptr.vmem [resolvable:$true] %s27_s3 }
  0x28   :  { %s2286_s18 = scalar_lea.vmem %s109_s16, 16  ;;  %s2290_s19 = scalar_lea.vmem %s109_s16, 32 }
  0x29   :  { %p2287_p1 = scmp.ne.s32.totalorder %s109_s16, %s2286_s18  ;;  %p2291_p2 = scmp.lt.s32.totalorder %s109_s16, %s109_s16 }
  0x2a   :  { %p2292_p3 = scmp.lt.s32.totalorder %s2290_s19, %s2286_s18 }
  0x2c   :  { %p2293_p4 = por %p2292_p3, %p2291_p2 }
  0x2e   :  { %p2294_p5 = pnand %p2293_p4, %p2287_p1 }
  0x30   :  { %2297 = shalt.err (!%p2294_p5)
}
  0x31   :  { %111 = dma.hbm_to_vmem [thread:$0]  %s2877_s7, 16, %s109_s16, [#allocation16]  }
  0x32   :  { %s2306_s24 = scalar_lea.vmem %s28_s3, 256  ;;  %p2311_p7 = scmp.lt.s32.totalorder %s28_s3, %s28_s3 }
  0x33   :  { %p2307_p6 = scmp.ne.s32.totalorder %s28_s3, %s2306_s24  ;;  %p2312_p8 = scmp.lt.s32.totalorder %s2306_s24, %s2306_s24 }
  0x35   :  { %p2313_p9 = por %p2312_p8, %p2311_p7 }
  0x37   :  { %p2314_p10 = pnand %p2313_p9, %p2307_p6 }
  0x39   :  { %2317 = shalt.err (!%p2314_p10)
}
  0x3a   :  { %s2437_s5 = smov 128   ;;  %s2438_s25 = smov 8  }
  0x3b   :  { %33 = dma.hbm_to_vmem [thread:$0]  %s2870_s0, 256, %s28_s3, [#allocation4], %s2437_s5, %s2437_s5, %s2438_s25  }
  0x3c   :  { %s2439_s28 = smov [#allocation8]   ;;  %s2440_s30 = smov [#allocation11]  }
  0x3d   :  { %s51_s29 = sshll.u32 %s2439_s28, 4  ;;  %s74_s12 = sshll.u32 %s2440_s30, 4  ;;  %s52_s29 = int_to_ptr.vmem [resolvable:$true] %s51_s29  ;;  %s75_s12 = int_to_ptr.vmem [resolvable:$true] %s74_s12 }
  0x3e   :  { %s2326_s7 = scalar_lea.vmem %s52_s29, 256  ;;  %p2331_p12 = scmp.lt.s32.totalorder %s52_s29, %s52_s29 }
  0x3f   :  { %p2327_p11 = scmp.ne.s32.totalorder %s52_s29, %s2326_s7  ;;  %p2332_p13 = scmp.lt.s32.totalorder %s2326_s7, %s2326_s7 }
  0x41   :  { %p2333_p0 = por %p2332_p13, %p2331_p12 }
  0x43   :  { %p2334_p1 = pnand %p2333_p0, %p2327_p11 }
  0x45   :  { %2337 = shalt.err (!%p2334_p1)
}
  0x46   :  { %57 = dma.hbm_to_vmem [thread:$0]  %s2872_s2, 256, %s52_s29, [#allocation7], %s2431_s20, %s2431_s20, %s2432_s21  }
  0x47   :  { %s2346_s0 = scalar_lea.vmem %s75_s12, 16  ;;  %s2350_s14 = scalar_lea.vmem %s75_s12, 32 }
  0x48   :  { %p2347_p2 = scmp.ne.s32.totalorder %s75_s12, %s2346_s0  ;;  %p2351_p3 = scmp.lt.s32.totalorder %s75_s12, %s75_s12 }
  0x49   :  { %p2352_p4 = scmp.lt.s32.totalorder %s2350_s14, %s2346_s0 }
  0x4b   :  { %p2353_p5 = por %p2352_p4, %p2351_p3 }
  0x4d   :  { %p2354_p6 = pnand %p2353_p5, %p2347_p2 }
  0x4f   :  { %2357 = shalt.err (!%p2354_p6)
}
  0x50   :  { %77 = dma.hbm_to_vmem [thread:$0]  %s2874_s4, 16, %s75_s12, [#allocation10]  }
  0x51   :  { %s2441_s17 = smov [#allocation14]   ;;  %s2442_s18 = smov [#allocation17]  }
  0x52   :  { %s95_s3 = sshll.u32 %s2441_s17, 4  ;;  %s118_s19 = sshll.u32 %s2442_s18, 4  ;;  %s96_s3 = int_to_ptr.vmem [resolvable:$true] %s95_s3  ;;  %s119_s19 = int_to_ptr.vmem [resolvable:$true] %s118_s19 }
  0x53   :  { %s2366_s22 = scalar_lea.vmem %s96_s3, 256  ;;  %p2371_p8 = scmp.lt.s32.totalorder %s96_s3, %s96_s3 }
  0x54   :  { %p2367_p7 = scmp.ne.s32.totalorder %s96_s3, %s2366_s22  ;;  %p2372_p9 = scmp.lt.s32.totalorder %s2366_s22, %s2366_s22 }
  0x56   :  { %p2373_p10 = por %p2372_p9, %p2371_p8 }
  0x58   :  { %p2374_p11 = pnand %p2373_p10, %p2367_p7 }
  0x5a   :  { %2377 = shalt.err (!%p2374_p11)
}
  0x5b   :  { %101 = dma.hbm_to_vmem [thread:$0]  %s2876_s6, 256, %s96_s3, [#allocation13], %s2431_s20, %s2431_s20, %s2432_s21  }
  0x5c   :  { %s2386_s4 = scalar_lea.vmem %s119_s19, 16  ;;  %s2390_s24 = scalar_lea.vmem %s119_s19, 32 }
  0x5d   :  { %p2387_p12 = scmp.ne.s32.totalorder %s119_s19, %s2386_s4  ;;  %p2391_p13 = scmp.lt.s32.totalorder %s119_s19, %s119_s19 }
  0x5e   :  { %p2392_p0 = scmp.lt.s32.totalorder %s2390_s24, %s2386_s4 }
  0x60   :  { %p2393_p1 = por %p2392_p0, %p2391_p13 }
  0x62   :  { %p2394_p2 = pnand %p2393_p1, %p2387_p12 }
  0x64   :  { %2397 = shalt.err (!%p2394_p2)
}
  0x65   :  { %121 = dma.hbm_to_vmem [thread:$0]  %s2878_s8, 16, %s119_s19, [#allocation16]  }
  0x66   :  { %2418 = dma.done.wait [#allocation4], 256  }
  0x67   :  { %2419 = vsyncadd [#allocation4], 4294967040 }
  0x68   :  { %2420 = dma.done.wait [#allocation7], 384  }
  0x69   :  { %2421 = vsyncadd [#allocation7], 4294966912 }
  0x6a   :  { %2422 = dma.done.wait [#allocation10], 32  }
  0x6b   :  { %2423 = vsyncadd [#allocation10], 4294967264 }
  0x6c   :  { %2424 = dma.done.wait [#allocation13], 512  }
  0x6d   :  { %2425 = vsyncadd [#allocation13], 4294966784 }
  0x6e   :  { %2426 = dma.done.wait [#allocation16], 32  }
  0x6f   :  { %2427 = vsyncadd [#allocation16], 4294967264  ;;  %v2443_v0 = vmov 0.0   ;;  %vm2444_vm0 = vmmov 0   ;;  %v2554_v1 = vld [vmem:[#allocation8 + $0x8] sm:$0xff]   ;;  %v2113_v2 = vld [vmem:[#allocation6] sm:$0xff]  }
  0x70   :  { %1949 = vmatprep.subr.bf16.mxu1 %v2443_v0  ;;  %1943 = vmatprep.subr.bf16.mxu0 %v2443_v0  ;;  %v2557_v3 = vld [vmem:[#allocation8] sm:$0xff]   ;;  %v154_v4 = vld [vmem:[#allocation3] sm:$0xff]  ;;  %v155_v5 = vld [vmem:[#allocation3 + $0x8] sm:$0xff]  ;;  %vm177_vm1 = vcmask 130048   ;;  %v2445_v8 = vmov 0   ;;  %s2446_s6 = smov 96  }
  0x71   :  { %1945 = vmatprep.mubr.msk.bf16.mxu0 %vm2444_vm0, %v2443_v0  ;;  %1953 = vmatprep.mubr.msk.bf16.mxu1 %vm2444_vm0, %v2443_v0  ;;  %v1829_v6 = vld [vmem:[#allocation11] ss:$0 sm:$0xff]  ;;  %v156_v7 = vpack.c.bf16 %v155_v5, %v154_v4  ;;  %v1823_v13 = vld [vmem:[#allocation9] ss:$0 sm:$0xff]  ;;  %s2447_s8 = smov 32   ;;  %vm234_vm2 = vcmask 261120  }
  0x72   :  { %1950 = vmatpush3.bf16.msra.mxu1 %v2554_v1  ;;  %1944 = vmatpush3.bf16.msra.mxu0 %v2113_v2  ;;  %vm323_vm3 = vcmask 253952   ;;  %vm508_vm4 = vcmask 256002   ;;  %vm415_vm5 = vcmask 254977   ;;  %vm601_vm6 = vcmask 257027  }
  0x73   :  { %1951 = vmatprep.subr.bf16.mxu1 %v2443_v0  ;;  %290 = vrot.lane.b32.xlu0 %v1829_v6, %s2431_s20  ;;  %vm1802_vm7 = vcmask 254976  }
  0x74   :  { %1957 = vmatprep.subr.bf16.mxu0 %v2443_v0 }
  0x75   :  { %1946 = vmatmul.mubr.msk.bf16.vlgmr.msra.gmra.mxu0 %vm177_vm1, %v156_v7 }
  0x76   :  { %1952 = vmatpush3.bf16.msra.mxu1 %v2557_v3  ;;  %1958 = vmatpush3.bf16.msra.mxu0 %v2554_v1 }
  0x77   :  { %1961 = vmatprep.mubr.msk.bf16.mxu0 %vm2444_vm0, %v2443_v0  ;;  %1959 = vmatprep.subr.bf16.mxu0 %v2443_v0 }
  0x78   :  { %1965 = vmatprep.subr.bf16.mxu1 %v2443_v0 }
  0x79   :  { %1954 = vmatmul.mubr.bf16.vlgmr.msra.gmra.mxu1 %v2445_v8 }
  0x7a   :  { %1966 = vmatpush3.bf16.msra.mxu1 %v2554_v1  ;;  %1969 = vmatprep.mubr.msk.bf16.mxu1 %vm2444_vm0, %v2443_v0 }
  0x7b   :  { %1960 = vmatpush3.bf16.msra.mxu0 %v2557_v3  ;;  %1967 = vmatprep.subr.bf16.mxu1 %v2443_v0 }
  0x7c   :  { %1973 = vmatprep.subr.bf16.mxu0 %v2443_v0 }
  0x7e   :  { %1968 = vmatpush3.bf16.msra.mxu1 %v2557_v3 }
  0x7f   :  { %1981 = vmatprep.subr.bf16.mxu1 %v2443_v0 }
  0xe5   :  { %v2577_v10 = vpop.permute.xlu0 %290 }
 0x135   :  { %v215_v9 = vpop.f32.mrf.mxu0 }
 0x136   :  { %v2583_v21 = vadd.f32 %v1823_v13, %v215_v9 }
 0x137   :  { %v1947_v11 = vpop.f32.mrf.mxu0 }
 0x139   :  { %v272_v12 = vpop.f32.mrf.mxu1  ;;  %v218_v15 = vpop.f32.mrf.mxu0 }
 0x13a   :  { %v293_v14 = vadd.f32 %v2577_v10, %v272_v12  ;;  %v2580_v17 = vadd.f32 %v1823_v13, %v218_v15  ;;  %v278_v22 = vadd.f32 %v272_v12, %v2583_v21 }
 0x13b   :  { %v1955_v16 = vpop.f32.mrf.mxu1  ;;  %v1948_v18 = vpop.f32.mrf.mxu0 }
 0x13c   :  { %295 = vrot.lane.b32.xlu0 %v293_v14, %s2431_s20  ;;  %v1828_v23 = vmul.f32 -1.442695, %v278_v22 }
 0x13d   :  { %v275_v19 = vpop.f32.mrf.mxu1 }
 0x13e   :  { %2122 = vpow2.f32 %v1828_v23 }
 0x13f   :  { %v1956_v20 = vpop.f32.mrf.mxu1 }
 0x14b   :  { %v2123_v24 = vpop.eup %2122 }
 0x14c   :  { %v282_v25 = vadd.f32 1.0, %v2123_v24 }
 0x14e   :  { %2124 = vrcp.f32 %v282_v25 }
 0x15b   :  { %v2125_v26 = vpop.eup %2124 }
 0x1ae   :  { %v296_v27 = vpop.permute.xlu0 %295 }
 0x1af   :  { %v298_v28 = vmul.f32 %v2125_v26, %v296_v27 }
 0x1b1   :  { %300 = vrot.lane.b32.xlu1 %v298_v28, %s2431_s20 }
 0x223   :  { %v301_v29 = vpop.permute.xlu1 %300 }
 0x224   :  { %v303_v30 = vadd.f32 %v301_v29, %v2583_v21 }
 0x226   :  { %2126 = vtanh.f32 %v303_v30 }
 0x233   :  { %v2127_v31 = vpop.eup %2126 }
 0x234   :  { %v305_v32 = vsub.f32 0.0, %v2127_v31 }
 0x236   :  { %307 = vrot.lane.b32.xlu1 %v305_v32, %s2446_s6 }
 0x2a8   :  { %v308_v33 = vpop.permute.xlu1 %307 }
 0x2a9   :  { %v310_v34 = vmul.f32 %v2125_v26, %v308_v33 }
 0x2ab   :  { %312 = vrot.lane.b32.xlu0 %v310_v34, %s2447_s8 }
 0x31d   :  { %v313_v35 = vpop.permute.xlu0 %312 }
 0x31e   :  { %v315_v36 = vadd.f32 %v2127_v31, %v313_v35 }
 0x320   :  { %v2590_v37 = vpack.c.bf16 %v315_v36, %v315_v36 }
 0x322   :  { %325 = vrot.lane.b32.xlu1 %v2590_v37, %s2431_s20 }
 0x394   :  { %v326_v38 = vpop.permute.xlu1 %325 }
 0x395   :  { %1962 = vmatmul.mubr.msk.bf16.vlgmr.msra.gmra.mxu0 %vm234_vm2, %v326_v38 }
 0x396   :  { %1974 = vmatpush3.bf16.msra.mxu0 %v2554_v1  ;;  %1977 = vmatprep.mubr.msk.bf16.mxu0 %vm2444_vm0, %v2443_v0 }
 0x397   :  { %1975 = vmatprep.subr.bf16.mxu0 %v2443_v0 }
 0x39a   :  { %1976 = vmatpush3.bf16.msra.mxu0 %v2557_v3 }
 0x39b   :  { %1989 = vmatprep.subr.bf16.mxu0 %v2443_v0 }
 0x455   :  { %v364_v39 = vpop.f32.mrf.mxu0 }
 0x456   :  { %v380_v40 = vadd.f32 %v364_v39, %v2577_v10  ;;  %v371_v45 = vrot.slane %v364_v39, 6 }
 0x457   :  { %v1963_v41 = vpop.f32.mrf.mxu0 }
 0x458   :  { %v382_v42 = vrot.slane %v380_v40, 6  ;;  %v373_v46 = vadd.f32 %v371_v45, %v2583_v21 }
 0x459   :  { %v367_v43 = vpop.f32.mrf.mxu0 }
 0x45a   :  { %383 = vrot.lane.b32.xlu0 %v382_v42, %s2431_s20  ;;  %v1832_v47 = vmul.f32 -1.442695, %v373_v46 }
 0x45b   :  { %v1964_v44 = vpop.f32.mrf.mxu0 }
 0x45c   :  { %2128 = vpow2.f32 %v1832_v47 }
 0x469   :  { %v2129_v48 = vpop.eup %2128 }
 0x46a   :  { %v377_v49 = vadd.f32 1.0, %v2129_v48 }
 0x46c   :  { %2130 = vrcp.f32 %v377_v49 }
 0x479   :  { %v2131_v50 = vpop.eup %2130 }
 0x4cc   :  { %v384_v51 = vpop.permute.xlu0 %383 }
 0x4cd   :  { %v386_v52 = vmul.f32 %v2131_v50, %v384_v51 }
 0x4cf   :  { %388 = vrot.lane.b32.xlu1 %v386_v52, %s2431_s20 }
 0x541   :  { %v389_v53 = vpop.permute.xlu1 %388 }
 0x542   :  { %v391_v54 = vadd.f32 %v389_v53, %v2583_v21 }
 0x544   :  { %2132 = vtanh.f32 %v391_v54 }
 0x551   :  { %v2133_v55 = vpop.eup %2132 }
 0x552   :  { %v394_v56 = vrot.slane %v2133_v55, 2 }
 0x554   :  { %v396_v57 = vsub.f32 %v315_v36, %v394_v56 }
 0x556   :  { %v398_v58 = vrot.slane %v396_v57, 6 }
 0x558   :  { %399 = vrot.lane.b32.xlu0 %v398_v58, %s2446_s6 }
 0x5ca   :  { %v400_v59 = vpop.permute.xlu0 %399 }
 0x5cb   :  { %v402_v60 = vmul.f32 %v2131_v50, %v400_v59 }
 0x5cd   :  { %404 = vrot.lane.b32.xlu1 %v402_v60, %s2447_s8 }
 0x63f   :  { %v405_v61 = vpop.permute.xlu1 %404 }
 0x640   :  { %v407_v62 = vadd.f32 %v2133_v55, %v405_v61 }
 0x642   :  { %v2608_v63 = vpack.c.bf16 %v407_v62, %v407_v62 }
 0x644   :  { %v417_v2 = vrot.slane %v2608_v63, 1 }
 0x646   :  { %418 = vrot.lane.b32.xlu0 %v417_v2, %s2431_s20 }
 0x6b8   :  { %v419_v4 = vpop.permute.xlu0 %418 }
 0x6b9   :  { %1970 = vmatmul.mubr.msk.bf16.vlgmr.msra.gmra.mxu1 %vm234_vm2, %v419_v4 }
 0x6ba   :  { %1982 = vmatpush3.bf16.msra.mxu1 %v2554_v1  ;;  %1985 = vmatprep.mubr.msk.bf16.mxu1 %vm2444_vm0, %v2443_v0 }
 0x6bb   :  { %1983 = vmatprep.subr.bf16.mxu1 %v2443_v0 }
 0x6be   :  { %1984 = vmatpush3.bf16.msra.mxu1 %v2557_v3 }
 0x6bf   :  { %1997 = vmatprep.subr.bf16.mxu1 %v2443_v0 }
 0x779   :  { %v457_v5 = vpop.f32.mrf.mxu1 }
 0x77a   :  { %v473_v6 = vadd.f32 %v457_v5, %v2577_v10  ;;  %v464_v13 = vrot.slane %v457_v5, 4 }
 0x77b   :  { %v1971_v7 = vpop.f32.mrf.mxu1 }
 0x77c   :  { %v475_v9 = vrot.slane %v473_v6, 4  ;;  %v466_v14 = vadd.f32 %v464_v13, %v2583_v21 }
 0x77d   :  { %v460_v11 = vpop.f32.mrf.mxu1 }
 0x77e   :  { %476 = vrot.lane.b32.xlu1 %v475_v9, %s2431_s20  ;;  %v1835_v15 = vmul.f32 -1.442695, %v466_v14 }
 0x77f   :  { %v1972_v12 = vpop.f32.mrf.mxu1 }
 0x780   :  { %2134 = vpow2.f32 %v1835_v15 }
 0x78d   :  { %v2135_v16 = vpop.eup %2134 }
 0x78e   :  { %v470_v18 = vadd.f32 1.0, %v2135_v16 }
 0x790   :  { %2136 = vrcp.f32 %v470_v18 }
 0x79d   :  { %v2137_v19 = vpop.eup %2136 }
 0x7f0   :  { %v477_v20 = vpop.permute.xlu1 %476 }
 0x7f1   :  { %v479_v22 = vmul.f32 %v2137_v19, %v477_v20 }
 0x7f3   :  { %481 = vrot.lane.b32.xlu0 %v479_v22, %s2431_s20 }
 0x865   :  { %v482_v23 = vpop.permute.xlu0 %481 }
 0x866   :  { %v484_v24 = vadd.f32 %v482_v23, %v2583_v21 }
 0x868   :  { %2138 = vtanh.f32 %v484_v24 }
 0x875   :  { %v2139_v25 = vpop.eup %2138 }
 0x876   :  { %v487_v26 = vrot.slane %v2139_v25, 2 }
 0x878   :  { %v489_v27 = vsub.f32 %v407_v62, %v487_v26 }
 0x87a   :  { %v491_v28 = vrot.slane %v489_v27, 6 }
 0x87c   :  { %492 = vrot.lane.b32.xlu1 %v491_v28, %s2446_s6 }
 0x8ee   :  { %v493_v29 = vpop.permute.xlu1 %492 }
 0x8ef   :  { %v495_v30 = vmul.f32 %v2137_v19, %v493_v29 }
 0x8f1   :  { %497 = vrot.lane.b32.xlu0 %v495_v30, %s2447_s8 }
 0x963   :  { %v498_v31 = vpop.permute.xlu0 %497 }
 0x964   :  { %v500_v32 = vadd.f32 %v2139_v25, %v498_v31 }
 0x966   :  { %v2626_v33 = vpack.c.bf16 %v500_v32, %v500_v32 }
 0x968   :  { %v510_v34 = vrot.slane %v2626_v33, 2 }
 0x96a   :  { %511 = vrot.lane.b32.xlu1 %v510_v34, %s2431_s20 }
 0x9dc   :  { %v512_v35 = vpop.permute.xlu1 %511 }
 0x9dd   :  { %1978 = vmatmul.mubr.msk.bf16.vlgmr.msra.gmra.mxu0 %vm234_vm2, %v512_v35 }
 0x9de   :  { %1990 = vmatpush3.bf16.msra.mxu0 %v2554_v1  ;;  %1993 = vmatprep.mubr.msk.bf16.mxu0 %vm2444_vm0, %v2443_v0 }
 0x9df   :  { %1991 = vmatprep.subr.bf16.mxu0 %v2443_v0 }
 0x9e2   :  { %1992 = vmatpush3.bf16.msra.mxu0 %v2557_v3 }
 0x9e3   :  { %2005 = vmatprep.subr.bf16.mxu0 %v2443_v0 }
 0xa9d   :  { %v550_v36 = vpop.f32.mrf.mxu0 }
 0xa9e   :  { %v566_v38 = vadd.f32 %v550_v36, %v2577_v10  ;;  %v557_v43 = vrot.slane %v550_v36, 2 }
 0xa9f   :  { %v1979_v39 = vpop.f32.mrf.mxu0 }
 0xaa0   :  { %v568_v40 = vrot.slane %v566_v38, 2  ;;  %v559_v44 = vadd.f32 %v557_v43, %v2583_v21 }
 0xaa1   :  { %v553_v41 = vpop.f32.mrf.mxu0 }
 0xaa2   :  { %569 = vrot.lane.b32.xlu0 %v568_v40, %s2431_s20  ;;  %v1838_v45 = vmul.f32 -1.442695, %v559_v44 }
 0xaa3   :  { %v1980_v42 = vpop.f32.mrf.mxu0 }
 0xaa4   :  { %2140 = vpow2.f32 %v1838_v45 }
 0xab1   :  { %v2141_v46 = vpop.eup %2140 }
 0xab2   :  { %v563_v47 = vadd.f32 1.0, %v2141_v46 }
 0xab4   :  { %2142 = vrcp.f32 %v563_v47 }
 0xac1   :  { %v2143_v48 = vpop.eup %2142 }
 0xb14   :  { %v570_v49 = vpop.permute.xlu0 %569 }
 0xb15   :  { %v572_v50 = vmul.f32 %v2143_v48, %v570_v49 }
 0xb17   :  { %574 = vrot.lane.b32.xlu1 %v572_v50, %s2431_s20 }
 0xb89   :  { %v575_v51 = vpop.permute.xlu1 %574 }
 0xb8a   :  { %v577_v52 = vadd.f32 %v575_v51, %v2583_v21 }
 0xb8c   :  { %2144 = vtanh.f32 %v577_v52 }
 0xb99   :  { %v2145_v53 = vpop.eup %2144 }
 0xb9a   :  { %v580_v54 = vrot.slane %v2145_v53, 2 }
 0xb9c   :  { %v582_v55 = vsub.f32 %v500_v32, %v580_v54 }
 0xb9e   :  { %v584_v56 = vrot.slane %v582_v55, 6 }
 0xba0   :  { %585 = vrot.lane.b32.xlu0 %v584_v56, %s2446_s6 }
 0xc12   :  { %v586_v57 = vpop.permute.xlu0 %585 }
 0xc13   :  { %v588_v58 = vmul.f32 %v2143_v48, %v586_v57 }
 0xc15   :  { %590 = vrot.lane.b32.xlu1 %v588_v58, %s2447_s8 }
 0xc87   :  { %v591_v59 = vpop.permute.xlu1 %590 }
 0xc88   :  { %v593_v60 = vadd.f32 %v2145_v53, %v591_v59 }
 0xc8a   :  { %v2644_v61 = vpack.c.bf16 %v593_v60, %v593_v60 }
 0xc8c   :  { %v603_v62 = vrot.slane %v2644_v61, 3 }
 0xc8e   :  { %604 = vrot.lane.b32.xlu0 %v603_v62, %s2431_s20 }
 0xd00   :  { %v605_v21 = vpop.permute.xlu0 %604 }
 0xd01   :  { %1986 = vmatmul.mubr.msk.bf16.vlgmr.msra.gmra.mxu1 %vm234_vm2, %v605_v21 }
 0xd02   :  { %1998 = vmatpush3.bf16.msra.mxu1 %v2554_v1  ;;  %2001 = vmatprep.mubr.msk.bf16.mxu1 %vm2444_vm0, %v2443_v0 }
 0xd03   :  { %1999 = vmatprep.subr.bf16.mxu1 %v2443_v0 }
 0xd06   :  { %2000 = vmatpush3.bf16.msra.mxu1 %v2557_v3 }
 0xd07   :  { %2013 = vmatprep.subr.bf16.mxu1 %v2443_v0 }
 0xdc1   :  { %v643_v2 = vpop.f32.mrf.mxu1 }
 0xdc2   :  { %v656_v4 = vadd.f32 %v643_v2, %v2577_v10  ;;  %v649_v9 = vadd.f32 %v643_v2, %v2580_v17 }
 0xdc3   :  { %v1987_v5 = vpop.f32.mrf.mxu1 }
 0xdc4   :  { %658 = vrot.lane.b32.xlu1 %v656_v4, %s2431_s20  ;;  %v1841_v11 = vmul.f32 -1.442695, %v649_v9 }
 0xdc5   :  { %v646_v6 = vpop.f32.mrf.mxu1 }
 0xdc6   :  { %2146 = vpow2.f32 %v1841_v11 }
 0xdc7   :  { %v1988_v7 = vpop.f32.mrf.mxu1 }
 0xdd3   :  { %v2147_v12 = vpop.eup %2146 }
 0xdd4   :  { %v653_v13 = vadd.f32 1.0, %v2147_v12 }
 0xdd6   :  { %2148 = vrcp.f32 %v653_v13 }
 0xde3   :  { %v2149_v14 = vpop.eup %2148 }
 0xe36   :  { %v659_v15 = vpop.permute.xlu1 %658 }
 0xe37   :  { %v661_v16 = vmul.f32 %v2149_v14, %v659_v15 }
 0xe39   :  { %663 = vrot.lane.b32.xlu0 %v661_v16, %s2431_s20 }
 0xeab   :  { %v664_v18 = vpop.permute.xlu0 %663 }
 0xeac   :  { %v666_v19 = vadd.f32 %v664_v18, %v2580_v17 }
 0xeae   :  { %2150 = vtanh.f32 %v666_v19 }
 0xebb   :  { %v2151_v20 = vpop.eup %2150 }
 0xebc   :  { %v669_v22 = vrot.slane %v2151_v20, 2 }
 0xebe   :  { %v671_v23 = vsub.f32 %v593_v60, %v669_v22 }
 0xec0   :  { %v673_v24 = vrot.slane %v671_v23, 6 }
 0xec2   :  { %674 = vrot.lane.b32.xlu1 %v673_v24, %s2446_s6 }
 0xf34   :  { %v675_v25 = vpop.permute.xlu1 %674 }
 0xf35   :  { %v677_v26 = vmul.f32 %v2149_v14, %v675_v25 }
 0xf37   :  { %679 = vrot.lane.b32.xlu0 %v677_v26, %s2447_s8 }
 0xfa9   :  { %v680_v27 = vpop.permute.xlu0 %679 }
 0xfaa   :  { %v682_v28 = vadd.f32 %v2151_v20, %v680_v27 }
 0xfac   :  { %v2662_v29 = vpack.c.bf16 %v682_v28, %v682_v28 }
 0xfae   :  { %691 = vrot.lane.b32.xlu1 %v2662_v29, %s2431_s20 }
0x1020   :  { %v692_v30 = vpop.permute.xlu1 %691 }
0x1021   :  { %1994 = vmatmul.mubr.msk.bf16.vlgmr.msra.gmra.mxu0 %vm234_vm2, %v692_v30 }
0x1022   :  { %2006 = vmatpush3.bf16.msra.mxu0 %v2554_v1  ;;  %2009 = vmatprep.mubr.msk.bf16.mxu0 %vm2444_vm0, %v2443_v0 }
0x1023   :  { %2007 = vmatprep.subr.bf16.mxu0 %v2443_v0 }
0x1026   :  { %2008 = vmatpush3.bf16.msra.mxu0 %v2557_v3 }
0x1027   :  { %2021 = vmatprep.subr.bf16.mxu0 %v2443_v0 }
0x10e1   :  { %v730_v31 = vpop.f32.mrf.mxu0 }
0x10e2   :  { %v746_v32 = vadd.f32 %v730_v31, %v2577_v10  ;;  %v737_v39 = vrot.slane %v730_v31, 6 }
0x10e3   :  { %v1995_v34 = vpop.f32.mrf.mxu0 }
0x10e4   :  { %v748_v35 = vrot.slane %v746_v32, 6  ;;  %v739_v1 = vadd.f32 %v737_v39, %v2580_v17 }
0x10e5   :  { %v733_v36 = vpop.f32.mrf.mxu0 }
0x10e6   :  { %749 = vrot.lane.b32.xlu0 %v748_v35, %s2431_s20  ;;  %v1844_v40 = vmul.f32 -1.442695, %v739_v1 }
0x10e7   :  { %v1996_v38 = vpop.f32.mrf.mxu0 }
0x10e8   :  { %2152 = vpow2.f32 %v1844_v40 }
0x10f5   :  { %v2153_v41 = vpop.eup %2152 }
0x10f6   :  { %v743_v42 = vadd.f32 1.0, %v2153_v41 }
0x10f8   :  { %2154 = vrcp.f32 %v743_v42 }
0x1105   :  { %v2155_v3 = vpop.eup %2154 }
0x1158   :  { %v750_v43 = vpop.permute.xlu0 %749 }
0x1159   :  { %v752_v44 = vmul.f32 %v2155_v3, %v750_v43 }
0x115b   :  { %754 = vrot.lane.b32.xlu1 %v752_v44, %s2431_s20 }
0x11cd   :  { %v755_v45 = vpop.permute.xlu1 %754 }
0x11ce   :  { %v757_v46 = vadd.f32 %v755_v45, %v2580_v17 }
0x11d0   :  { %2156 = vtanh.f32 %v757_v46 }
0x11dd   :  { %v2157_v47 = vpop.eup %2156 }
0x11de   :  { %v760_v48 = vrot.slane %v2157_v47, 2 }
0x11e0   :  { %v762_v49 = vsub.f32 %v682_v28, %v760_v48 }
0x11e2   :  { %v764_v50 = vrot.slane %v762_v49, 6 }
0x11e4   :  { %765 = vrot.lane.b32.xlu0 %v764_v50, %s2446_s6  ;;  %v2711_v50 = vld [vmem:[#allocation14 + $0x8] sm:$0xff]  }
0x1256   :  { %v766_v51 = vpop.permute.xlu0 %765 }
0x1257   :  { %v768_v52 = vmul.f32 %v2155_v3, %v766_v51 }
0x1259   :  { %770 = vrot.lane.b32.xlu1 %v768_v52, %s2447_s8  ;;  %v2715_v52 = vld [vmem:[#allocation14] sm:$0xff]  }
0x12cb   :  { %v771_v53 = vpop.permute.xlu1 %770 }
0x12cc   :  { %v773_v54 = vadd.f32 %v2157_v47, %v771_v53 }
0x12ce   :  { %v2680_v55 = vpack.c.bf16 %v773_v54, %v773_v54 }
0x12d0   :  { %v782_v56 = vrot.slane %v2680_v55, 1 }
0x12d2   :  { %783 = vrot.lane.b32.xlu0 %v782_v56, %s2431_s20 }
0x1344   :  { %v784_v57 = vpop.permute.xlu0 %783 }
0x1345   :  { %2002 = vmatmul.mubr.msk.bf16.vlgmr.msra.gmra.mxu1 %vm234_vm2, %v784_v57 }
0x1346   :  { %2017 = vmatprep.mubr.msk.bf16.mxu1 %vm2444_vm0, %v2443_v0 }
0x1405   :  { %v822_v58 = vpop.f32.mrf.mxu1 }
0x1406   :  { %v838_v59 = vadd.f32 %v822_v58, %v2577_v10  ;;  %v829_v4 = vrot.slane %v822_v58, 4 }
0x1407   :  { %v2003_v60 = vpop.f32.mrf.mxu1 }
0x1408   :  { %v840_v62 = vrot.slane %v838_v59, 4  ;;  %v831_v5 = vadd.f32 %v829_v4, %v2580_v17 }
0x1409   :  { %v825_v21 = vpop.f32.mrf.mxu1 }
0x140a   :  { %841 = vrot.lane.b32.xlu1 %v840_v62, %s2431_s20  ;;  %v1847_v6 = vmul.f32 -1.442695, %v831_v5 }
0x140b   :  { %v2004_v2 = vpop.f32.mrf.mxu1 }
0x140c   :  { %2158 = vpow2.f32 %v1847_v6 }
0x1419   :  { %v2159_v7 = vpop.eup %2158 }
0x141a   :  { %v835_v9 = vadd.f32 1.0, %v2159_v7  ;;  %v1852_v7 = vld [vmem:[#allocation15] ss:$0 sm:$0xff] }
0x141c   :  { %2160 = vrcp.f32 %v835_v9 }
0x1429   :  { %v2161_v11 = vpop.eup %2160 }
0x147c   :  { %v842_v12 = vpop.permute.xlu1 %841 }
0x147d   :  { %v844_v13 = vmul.f32 %v2161_v11, %v842_v12 }
0x147f   :  { %846 = vrot.lane.b32.xlu0 %v844_v13, %s2431_s20 }
0x14f1   :  { %v847_v14 = vpop.permute.xlu0 %846 }
0x14f2   :  { %v849_v15 = vadd.f32 %v847_v14, %v2580_v17 }
0x14f4   :  { %2162 = vtanh.f32 %v849_v15 }
0x1501   :  { %v2163_v16 = vpop.eup %2162 }
0x1502   :  { %v852_v18 = vrot.slane %v2163_v16, 2 }
0x1504   :  { %v854_v19 = vsub.f32 %v773_v54, %v852_v18 }
0x1506   :  { %v856_v20 = vrot.slane %v854_v19, 6 }
0x1508   :  { %857 = vrot.lane.b32.xlu1 %v856_v20, %s2446_s6 }
0x157a   :  { %v858_v22 = vpop.permute.xlu1 %857 }
0x157b   :  { %v860_v23 = vmul.f32 %v2161_v11, %v858_v22 }
0x157d   :  { %862 = vrot.lane.b32.xlu0 %v860_v23, %s2447_s8 }
0x15ef   :  { %v863_v24 = vpop.permute.xlu0 %862 }
0x15f0   :  { %v865_v25 = vadd.f32 %v2163_v16, %v863_v24 }
0x15f2   :  { %v866_v26 = vpack.c.bf16 %v865_v25, %v865_v25 }
0x15f4   :  { %v874_v27 = vrot.slane %v866_v26, 2 }
0x15f6   :  { %875 = vrot.lane.b32.xlu1 %v874_v27, %s2431_s20 }
0x1668   :  { %v876_v28 = vpop.permute.xlu1 %875 }
0x1669   :  { %2010 = vmatmul.mubr.msk.bf16.vlgmr.msra.gmra.mxu0 %vm234_vm2, %v876_v28 }
0x166a   :  { %2025 = vmatprep.mubr.msk.bf16.mxu0 %vm2444_vm0, %v2443_v0  ;;  %2022 = vmatpush3.bf16.msra.mxu0 %v2711_v50 }
0x166b   :  { %2023 = vmatprep.subr.bf16.mxu0 %v2443_v0 }
0x166e   :  { %2024 = vmatpush3.bf16.msra.mxu0 %v2715_v52 }
0x166f   :  { %2037 = vmatprep.subr.bf16.mxu0 %v2443_v0 }
0x1671   :  { %2026 = vmatmul.mubr.bf16.vlgmr.msra.gmra.mxu0 %v2445_v8  ;;  %v2117_v8 = vld [vmem:[#allocation12 + $0x8] sm:$0xff]  }
0x1672   :  { %2038 = vmatpush3.bf16.msra.mxu0 %v2711_v50  ;;  %2041 = vmatprep.mubr.msk.bf16.mxu0 %vm2444_vm0, %v2443_v0 }
0x1673   :  { %2039 = vmatprep.subr.bf16.mxu0 %v2443_v0  ;;  %2014 = vmatpush3.bf16.msra.mxu1 %v2117_v8 }
0x1674   :  { %2015 = vmatprep.subr.bf16.mxu1 %v2443_v0 }
0x1676   :  { %2040 = vmatpush3.bf16.msra.mxu0 %v2715_v52 }
0x1677   :  { %2053 = vmatprep.subr.bf16.mxu0 %v2443_v0 }
0x1729   :  { %v914_v30 = vpop.f32.mrf.mxu0 }
0x172a   :  { %v930_v31 = vadd.f32 %v914_v30, %v2577_v10  ;;  %v921_v38 = vrot.slane %v914_v30, 2 }
0x172b   :  { %v2011_v32 = vpop.f32.mrf.mxu0 }
0x172c   :  { %v932_v34 = vrot.slane %v930_v31, 2  ;;  %v923_v39 = vadd.f32 %v921_v38, %v2580_v17 }
0x172d   :  { %v917_v35 = vpop.f32.mrf.mxu0 }
0x172e   :  { %933 = vrot.lane.b32.xlu0 %v932_v34, %s2431_s20  ;;  %v1850_v1 = vmul.f32 -1.442695, %v923_v39 }
0x172f   :  { %v2012_v36 = vpop.f32.mrf.mxu0 }
0x1730   :  { %2164 = vpow2.f32 %v1850_v1 }
0x1731   :  { %v1091_v59 = vpop.f32.mrf.mxu0 }
0x1733   :  { %v2027_v60 = vpop.f32.mrf.mxu0 }
0x1735   :  { %v1094_v62 = vpop.f32.mrf.mxu0 }
0x1737   :  { %v2028_v21 = vpop.f32.mrf.mxu0 }
0x173d   :  { %v2165_v40 = vpop.eup %2164 }
0x173e   :  { %v927_v41 = vadd.f32 1.0, %v2165_v40 }
0x1740   :  { %2166 = vrcp.f32 %v927_v41 }
0x174d   :  { %v2167_v42 = vpop.eup %2166 }
0x17a0   :  { %v934_v3 = vpop.permute.xlu0 %933 }
0x17a1   :  { %v936_v43 = vmul.f32 %v2167_v42, %v934_v3 }
0x17a3   :  { %938 = vrot.lane.b32.xlu1 %v936_v43, %s2431_s20 }
0x1815   :  { %v939_v10 = vpop.permute.xlu1 %938 }
0x1816   :  { %v941_v44 = vadd.f32 %v939_v10, %v2580_v17 }
0x1818   :  { %2168 = vtanh.f32 %v941_v44 }
0x1825   :  { %v2169_v45 = vpop.eup %2168 }
0x1826   :  { %v944_v46 = vrot.slane %v2169_v45, 2 }
0x1828   :  { %v946_v47 = vsub.f32 %v865_v25, %v944_v46 }
0x182a   :  { %v948_v48 = vrot.slane %v946_v47, 6 }
0x182c   :  { %949 = vrot.lane.b32.xlu0 %v948_v48, %s2446_s6 }
0x1830   :  { %320 = vrot.lane.b32.xlu0 %v2590_v37, %s2431_s20 }
0x1834   :  { %505 = vrot.lane.b32.xlu0 %v2626_v33, %s2431_s20 }
0x1838   :  { %687 = vrot.lane.b32.xlu0 %v2662_v29, %s2431_s20  ;;  %v2118_v29 = vld [vmem:[#allocation12] sm:$0xff]  }
0x1839   :  { %2016 = vmatpush3.bf16.msra.mxu1 %v2118_v29 }
0x183a   :  { %2029 = vmatprep.subr.bf16.mxu1 %v2443_v0 }
0x183c   :  { %870 = vrot.lane.b32.xlu0 %v866_v26, %s2431_s20 }
0x189e   :  { %v950_v49 = vpop.permute.xlu0 %949 }
0x189f   :  { %v952_v17 = vmul.f32 %v2167_v42, %v950_v49 }
0x18a1   :  { %954 = vrot.lane.b32.xlu1 %v952_v17, %s2447_s8 }
0x18a2   :  { %v321_v51 = vpop.permute.xlu0 %320 }
0x18a3   :  { %324 = vst.msk [vmem:[#allocation2] sm:$0x1] %vm323_vm3, %v321_v51 }
0x18a5   :  { %412 = vrot.lane.b32.xlu1 %v2608_v63, %s2431_s20 }
0x18a6   :  { %v506_v37 = vpop.permute.xlu0 %505 }
0x18a7   :  { %509 = vst.msk [vmem:[#allocation2] sm:$0x4] %vm508_vm4, %v506_v37 }
0x18a9   :  { %598 = vrot.lane.b32.xlu1 %v2644_v61, %s2431_s20  ;;  %v1860_v61 = vld [vmem:[#allocation17] ss:$0 sm:$0xff] }
0x18aa   :  { %v688_v33 = vpop.permute.xlu0 %687  ;;  %1109 = vrot.lane.b32.xlu0 %v1860_v61, %s2431_s20 }
0x18ab   :  { %690 = vst.msk [vmem:[#allocation2 + $0x4] sm:$0x1] %vm323_vm3, %v688_v33 }
0x18ad   :  { %778 = vrot.lane.b32.xlu1 %v2680_v55, %s2431_s20 }
0x18ae   :  { %v871_v63 = vpop.permute.xlu0 %870 }
0x18af   :  { %873 = vst.msk [vmem:[#allocation2 + $0x4] sm:$0x4] %vm508_vm4, %v871_v63 }
0x1913   :  { %v955_v53 = vpop.permute.xlu1 %954 }
0x1914   :  { %v957_v54 = vadd.f32 %v2169_v45, %v955_v53 }
0x1916   :  { %v1886_v55 = vpack.c.bf16 %v957_v54, %v957_v54 }
0x1917   :  { %v413_v56 = vpop.permute.xlu1 %412 }
0x1918   :  { %416 = vst.msk [vmem:[#allocation2] sm:$0x2] %vm415_vm5, %v413_v56  ;;  %962 = vrot.lane.b32.xlu1 %v1886_v55, %s2431_s20 }
0x191b   :  { %v599_v57 = vpop.permute.xlu1 %598 }
0x191c   :  { %602 = vst.msk [vmem:[#allocation2] sm:$0x8] %vm601_vm6, %v599_v57  ;;  %v2741_v2 = vpop.permute.xlu0 %1109 }
0x191d   :  { %v1112_v4 = vadd.f32 %v2741_v2, %v1091_v59 }
0x191f   :  { %v779_v58 = vpop.permute.xlu1 %778  ;;  %1114 = vrot.lane.b32.xlu1 %v1112_v4, %s2431_s20 }
0x1920   :  { %781 = vst.msk [vmem:[#allocation2 + $0x4] sm:$0x2] %vm415_vm5, %v779_v58 }
0x198a   :  { %v963_v5 = vpop.permute.xlu1 %962 }
0x198b   :  { %965 = vst.msk [vmem:[#allocation2 + $0x4] sm:$0x8] %vm601_vm6, %v963_v5 }
0x1991   :  { %v1115_v22 = vpop.permute.xlu1 %1114 }
0x1992   :  { %v2119_v6 = vld [vmem:[#allocation2] sm:$0xff]  }
0x1993   :  { %2018 = vmatmul.mubr.msk.bf16.vlgmr.msra.gmra.mxu1 %vm234_vm2, %v2119_v6 }
0x1994   :  { %2030 = vmatpush3.bf16.msra.mxu1 %v2711_v50  ;;  %2033 = vmatprep.mubr.msk.bf16.mxu1 %vm2444_vm0, %v2443_v0 }
0x1995   :  { %2031 = vmatprep.subr.bf16.mxu1 %v2443_v0 }
0x1998   :  { %2032 = vmatpush3.bf16.msra.mxu1 %v2715_v52 }
0x1999   :  { %2045 = vmatprep.subr.bf16.mxu1 %v2443_v0 }
0x1a53   :  { %v1038_v9 = vpop.f32.mrf.mxu1 }
0x1a54   :  { %v2752_v11 = vadd.f32 %v1852_v7, %v1038_v9 }
0x1a55   :  { %v2019_v12 = vpop.f32.mrf.mxu1 }
0x1a56   :  { %v1097_v13 = vadd.f32 %v1091_v59, %v2752_v11 }
0x1a57   :  { %v1041_v14 = vpop.f32.mrf.mxu1 }
0x1a58   :  { %v2755_v15 = vadd.f32 %v1852_v7, %v1041_v14  ;;  %v1859_v16 = vmul.f32 -1.442695, %v1097_v13 }
0x1a59   :  { %v2020_v18 = vpop.f32.mrf.mxu1 }
0x1a5a   :  { %2170 = vpow2.f32 %v1859_v16 }
0x1a67   :  { %v2171_v19 = vpop.eup %2170 }
0x1a68   :  { %v1101_v20 = vadd.f32 1.0, %v2171_v19 }
0x1a6a   :  { %2172 = vrcp.f32 %v1101_v20 }
0x1a77   :  { %v2173_v23 = vpop.eup %2172 }
0x1a78   :  { %v1117_v24 = vmul.f32 %v2173_v23, %v1115_v22 }
0x1a7a   :  { %1119 = vrot.lane.b32.xlu0 %v1117_v24, %s2431_s20 }
0x1aec   :  { %v1120_v25 = vpop.permute.xlu0 %1119 }
0x1aed   :  { %v1122_v26 = vadd.f32 %v1120_v25, %v2752_v11 }
0x1aef   :  { %2174 = vtanh.f32 %v1122_v26 }
0x1afc   :  { %v2175_v27 = vpop.eup %2174 }
0x1afd   :  { %v1124_v28 = vsub.f32 0.0, %v2175_v27 }
0x1aff   :  { %1126 = vrot.lane.b32.xlu1 %v1124_v28, %s2446_s6 }
0x1b71   :  { %v1127_v30 = vpop.permute.xlu1 %1126 }
0x1b72   :  { %v1129_v31 = vmul.f32 %v2173_v23, %v1127_v30 }
0x1b74   :  { %1131 = vrot.lane.b32.xlu0 %v1129_v31, %s2447_s8 }
0x1be6   :  { %v1132_v32 = vpop.permute.xlu0 %1131 }
0x1be7   :  { %v1134_v34 = vadd.f32 %v2175_v27, %v1132_v32 }
0x1be9   :  { %v1135_v35 = vpack.c.bf16 %v1134_v34, %v1134_v34 }
0x1beb   :  { %1137 = vrot.lane.b32.xlu1 %v1135_v35, %s2431_s20 }
0x1c5d   :  { %v1138_v36 = vpop.permute.xlu1 %1137 }
0x1c5e   :  { %2034 = vmatmul.mubr.msk.bf16.vlgmr.msra.gmra.mxu1 %vm234_vm2, %v1138_v36 }
0x1c5f   :  { %2046 = vmatpush3.bf16.msra.mxu1 %v2711_v50  ;;  %2049 = vmatprep.mubr.msk.bf16.mxu1 %vm2444_vm0, %v2443_v0 }
0x1c60   :  { %2047 = vmatprep.subr.bf16.mxu1 %v2443_v0 }
0x1c63   :  { %2048 = vmatpush3.bf16.msra.mxu1 %v2715_v52 }
0x1c64   :  { %2061 = vmatprep.subr.bf16.mxu1 %v2443_v0 }
0x1d1e   :  { %v1176_v38 = vpop.f32.mrf.mxu1 }
0x1d1f   :  { %v1192_v39 = vadd.f32 %v1176_v38, %v2741_v2  ;;  %v1183_v3 = vrot.slane %v1176_v38, 6 }
0x1d20   :  { %v2035_v1 = vpop.f32.mrf.mxu1 }
0x1d21   :  { %v1194_v40 = vrot.slane %v1192_v39, 6  ;;  %v1185_v43 = vadd.f32 %v1183_v3, %v2752_v11 }
0x1d22   :  { %v1179_v41 = vpop.f32.mrf.mxu1 }
0x1d23   :  { %1195 = vrot.lane.b32.xlu0 %v1194_v40, %s2431_s20  ;;  %v1862_v10 = vmul.f32 -1.442695, %v1185_v43 }
0x1d24   :  { %v2036_v42 = vpop.f32.mrf.mxu1 }
0x1d25   :  { %2176 = vpow2.f32 %v1862_v10 }
0x1d32   :  { %v2177_v44 = vpop.eup %2176 }
0x1d33   :  { %v1189_v45 = vadd.f32 1.0, %v2177_v44 }
0x1d35   :  { %2178 = vrcp.f32 %v1189_v45 }
0x1d42   :  { %v2179_v46 = vpop.eup %2178 }
0x1d95   :  { %v1196_v47 = vpop.permute.xlu0 %1195 }
0x1d96   :  { %v1198_v48 = vmul.f32 %v2179_v46, %v1196_v47 }
0x1d98   :  { %1200 = vrot.lane.b32.xlu1 %v1198_v48, %s2431_s20 }
0x1e0a   :  { %v1201_v49 = vpop.permute.xlu1 %1200 }
0x1e0b   :  { %v1203_v17 = vadd.f32 %v1201_v49, %v2752_v11 }
0x1e0d   :  { %2180 = vtanh.f32 %v1203_v17 }
0x1e1a   :  { %v2181_v51 = vpop.eup %2180 }
0x1e1b   :  { %v1206_v37 = vrot.slane %v2181_v51, 2 }
0x1e1d   :  { %v1208_v33 = vsub.f32 %v1134_v34, %v1206_v37 }
0x1e1f   :  { %v1210_v63 = vrot.slane %v1208_v33, 6 }
0x1e21   :  { %1211 = vrot.lane.b32.xlu0 %v1210_v63, %s2446_s6 }
0x1e93   :  { %v1212_v8 = vpop.permute.xlu0 %1211 }
0x1e94   :  { %v1214_v61 = vmul.f32 %v2179_v46, %v1212_v8 }
0x1e96   :  { %1216 = vrot.lane.b32.xlu1 %v1214_v61, %s2447_s8 }
0x1f08   :  { %v1217_v29 = vpop.permute.xlu1 %1216 }
0x1f09   :  { %v1219_v53 = vadd.f32 %v2181_v51, %v1217_v29 }
0x1f0b   :  { %v1220_v54 = vpack.c.bf16 %v1219_v53, %v1219_v53 }
0x1f0d   :  { %v1222_v55 = vrot.slane %v1220_v54, 1 }
0x1f0f   :  { %1223 = vrot.lane.b32.xlu0 %v1222_v55, %s2431_s20 }
0x1f81   :  { %v1224_v56 = vpop.permute.xlu0 %1223 }
0x1f82   :  { %2042 = vmatmul.mubr.msk.bf16.vlgmr.msra.gmra.mxu0 %vm234_vm2, %v1224_v56 }
0x1f83   :  { %2054 = vmatpush3.bf16.msra.mxu0 %v2711_v50  ;;  %2057 = vmatprep.mubr.msk.bf16.mxu0 %vm2444_vm0, %v2443_v0 }
0x1f84   :  { %2055 = vmatprep.subr.bf16.mxu0 %v2443_v0 }
0x1f87   :  { %2056 = vmatpush3.bf16.msra.mxu0 %v2715_v52 }
0x1f88   :  { %2069 = vmatprep.subr.bf16.mxu0 %v2443_v0 }
0x2042   :  { %v1262_v57 = vpop.f32.mrf.mxu0 }
0x2043   :  { %v1278_v58 = vadd.f32 %v1262_v57, %v2741_v2  ;;  %v1269_v4 = vrot.slane %v1262_v57, 4 }
0x2044   :  { %v2043_v59 = vpop.f32.mrf.mxu0 }
0x2045   :  { %v1280_v60 = vrot.slane %v1278_v58, 4  ;;  %v1271_v5 = vadd.f32 %v1269_v4, %v2752_v11 }
0x2046   :  { %v1265_v62 = vpop.f32.mrf.mxu0 }
0x2047   :  { %1281 = vrot.lane.b32.xlu1 %v1280_v60, %s2431_s20  ;;  %v1864_v6 = vmul.f32 -1.442695, %v1271_v5 }
0x2048   :  { %v2044_v21 = vpop.f32.mrf.mxu0 }
0x2049   :  { %2182 = vpow2.f32 %v1864_v6 }
0x2056   :  { %v2183_v7 = vpop.eup %2182 }
0x2057   :  { %v1275_v9 = vadd.f32 1.0, %v2183_v7 }
0x2059   :  { %2184 = vrcp.f32 %v1275_v9 }
0x2066   :  { %v2185_v12 = vpop.eup %2184 }
0x20b9   :  { %v1282_v13 = vpop.permute.xlu1 %1281 }
0x20ba   :  { %v1284_v14 = vmul.f32 %v2185_v12, %v1282_v13 }
0x20bc   :  { %1286 = vrot.lane.b32.xlu0 %v1284_v14, %s2431_s20 }
0x212e   :  { %v1287_v16 = vpop.permute.xlu0 %1286 }
0x212f   :  { %v1289_v18 = vadd.f32 %v1287_v16, %v2752_v11 }
0x2131   :  { %2186 = vtanh.f32 %v1289_v18 }
0x213e   :  { %v2187_v19 = vpop.eup %2186 }
0x213f   :  { %v1292_v20 = vrot.slane %v2187_v19, 2 }
0x2141   :  { %v1294_v22 = vsub.f32 %v1219_v53, %v1292_v20 }
0x2143   :  { %v1296_v23 = vrot.slane %v1294_v22, 6 }
0x2145   :  { %1297 = vrot.lane.b32.xlu1 %v1296_v23, %s2446_s6 }
0x21b7   :  { %v1298_v24 = vpop.permute.xlu1 %1297 }
0x21b8   :  { %v1300_v25 = vmul.f32 %v2185_v12, %v1298_v24 }
0x21ba   :  { %1302 = vrot.lane.b32.xlu0 %v1300_v25, %s2447_s8 }
0x222c   :  { %v1303_v26 = vpop.permute.xlu0 %1302 }
0x222d   :  { %v1305_v27 = vadd.f32 %v2187_v19, %v1303_v26 }
0x222f   :  { %v1306_v28 = vpack.c.bf16 %v1305_v27, %v1305_v27 }
0x2231   :  { %v1308_v30 = vrot.slane %v1306_v28, 2 }
0x2233   :  { %1309 = vrot.lane.b32.xlu1 %v1308_v30, %s2431_s20 }
0x22a5   :  { %v1310_v31 = vpop.permute.xlu1 %1309 }
0x22a6   :  { %2050 = vmatmul.mubr.msk.bf16.vlgmr.msra.gmra.mxu1 %vm234_vm2, %v1310_v31 }
0x22a7   :  { %2062 = vmatpush3.bf16.msra.mxu1 %v2711_v50  ;;  %2065 = vmatprep.mubr.msk.bf16.mxu1 %vm2444_vm0, %v2443_v0 }
0x22a8   :  { %2063 = vmatprep.subr.bf16.mxu1 %v2443_v0 }
0x22ab   :  { %2064 = vmatpush3.bf16.msra.mxu1 %v2715_v52 }
0x22ac   :  { %2077 = vmatprep.subr.bf16.mxu1 %v2443_v0 }
0x2366   :  { %v1348_v32 = vpop.f32.mrf.mxu1 }
0x2367   :  { %v1364_v34 = vadd.f32 %v1348_v32, %v2741_v2  ;;  %v1355_v1 = vrot.slane %v1348_v32, 2 }
0x2368   :  { %v2051_v35 = vpop.f32.mrf.mxu1 }
0x2369   :  { %v1366_v36 = vrot.slane %v1364_v34, 2  ;;  %v1357_v40 = vadd.f32 %v1355_v1, %v2752_v11 }
0x236a   :  { %v1351_v38 = vpop.f32.mrf.mxu1 }
0x236b   :  { %1367 = vrot.lane.b32.xlu0 %v1366_v36, %s2431_s20  ;;  %v1866_v41 = vmul.f32 -1.442695, %v1357_v40 }
0x236c   :  { %v2052_v39 = vpop.f32.mrf.mxu1 }
0x236d   :  { %2188 = vpow2.f32 %v1866_v41 }
0x237a   :  { %v2189_v42 = vpop.eup %2188 }
0x237b   :  { %v1361_v3 = vadd.f32 1.0, %v2189_v42 }
0x237d   :  { %2190 = vrcp.f32 %v1361_v3 }
0x238a   :  { %v2191_v43 = vpop.eup %2190 }
0x23dd   :  { %v1368_v10 = vpop.permute.xlu0 %1367 }
0x23de   :  { %v1370_v44 = vmul.f32 %v2191_v43, %v1368_v10 }
0x23e0   :  { %1372 = vrot.lane.b32.xlu1 %v1370_v44, %s2431_s20 }
0x2452   :  { %v1373_v45 = vpop.permute.xlu1 %1372 }
0x2453   :  { %v1375_v46 = vadd.f32 %v1373_v45, %v2752_v11 }
0x2455   :  { %2192 = vtanh.f32 %v1375_v46 }
0x2462   :  { %v2193_v47 = vpop.eup %2192 }
0x2463   :  { %v1378_v48 = vrot.slane %v2193_v47, 2 }
0x2465   :  { %v1380_v49 = vsub.f32 %v1305_v27, %v1378_v48 }
0x2467   :  { %v1382_v17 = vrot.slane %v1380_v49, 6 }
0x2469   :  { %1383 = vrot.lane.b32.xlu0 %v1382_v17, %s2446_s6 }
0x24db   :  { %v1384_v51 = vpop.permute.xlu0 %1383 }
0x24dc   :  { %v1386_v37 = vmul.f32 %v2191_v43, %v1384_v51 }
0x24de   :  { %1388 = vrot.lane.b32.xlu1 %v1386_v37, %s2447_s8 }
0x2550   :  { %v1389_v33 = vpop.permute.xlu1 %1388 }
0x2551   :  { %v1391_v63 = vadd.f32 %v2193_v47, %v1389_v33 }
0x2553   :  { %v1392_v8 = vpack.c.bf16 %v1391_v63, %v1391_v63 }
0x2555   :  { %v1394_v61 = vrot.slane %v1392_v8, 3 }
0x2557   :  { %1395 = vrot.lane.b32.xlu0 %v1394_v61, %s2431_s20 }
0x25c9   :  { %v1396_v29 = vpop.permute.xlu0 %1395 }
0x25ca   :  { %2058 = vmatmul.mubr.msk.bf16.vlgmr.msra.gmra.mxu0 %vm234_vm2, %v1396_v29 }
0x25cb   :  { %2070 = vmatpush3.bf16.msra.mxu0 %v2711_v50  ;;  %2073 = vmatprep.mubr.msk.bf16.mxu0 %vm2444_vm0, %v2443_v0 }
0x25cc   :  { %2071 = vmatprep.subr.bf16.mxu0 %v2443_v0 }
0x25cf   :  { %2072 = vmatpush3.bf16.msra.mxu0 %v2715_v52 }
0x25d0   :  { %2085 = vmatprep.subr.bf16.mxu0 %v2443_v0 }
0x268a   :  { %v1434_v11 = vpop.f32.mrf.mxu0 }
0x268b   :  { %v1447_v53 = vadd.f32 %v1434_v11, %v2741_v2  ;;  %v1440_v57 = vadd.f32 %v1434_v11, %v2755_v15 }
0x268c   :  { %v2059_v54 = vpop.f32.mrf.mxu0 }
0x268d   :  { %1449 = vrot.lane.b32.xlu1 %v1447_v53, %s2431_s20  ;;  %v1868_v58 = vmul.f32 -1.442695, %v1440_v57 }
0x268e   :  { %v1437_v55 = vpop.f32.mrf.mxu0 }
0x268f   :  { %2194 = vpow2.f32 %v1868_v58 }
0x2690   :  { %v2060_v56 = vpop.f32.mrf.mxu0 }
0x269c   :  { %v2195_v59 = vpop.eup %2194 }
0x269d   :  { %v1444_v60 = vadd.f32 1.0, %v2195_v59 }
0x269f   :  { %2196 = vrcp.f32 %v1444_v60 }
0x26ac   :  { %v2197_v62 = vpop.eup %2196 }
0x26ff   :  { %v1450_v21 = vpop.permute.xlu1 %1449 }
0x2700   :  { %v1452_v4 = vmul.f32 %v2197_v62, %v1450_v21 }
0x2702   :  { %1454 = vrot.lane.b32.xlu0 %v1452_v4, %s2431_s20 }
0x2774   :  { %v1455_v5 = vpop.permute.xlu0 %1454 }
0x2775   :  { %v1457_v6 = vadd.f32 %v1455_v5, %v2755_v15 }
0x2777   :  { %2198 = vtanh.f32 %v1457_v6 }
0x2784   :  { %v2199_v7 = vpop.eup %2198 }
0x2785   :  { %v1460_v9 = vrot.slane %v2199_v7, 2 }
0x2787   :  { %v1462_v12 = vsub.f32 %v1391_v63, %v1460_v9 }
0x2789   :  { %v1464_v13 = vrot.slane %v1462_v12, 6 }
0x278b   :  { %1465 = vrot.lane.b32.xlu1 %v1464_v13, %s2446_s6 }
0x27fd   :  { %v1466_v14 = vpop.permute.xlu1 %1465 }
0x27fe   :  { %v1468_v16 = vmul.f32 %v2197_v62, %v1466_v14 }
0x2800   :  { %1470 = vrot.lane.b32.xlu0 %v1468_v16, %s2447_s8 }
0x2872   :  { %v1471_v18 = vpop.permute.xlu0 %1470 }
0x2873   :  { %v1473_v19 = vadd.f32 %v2199_v7, %v1471_v18 }
0x2875   :  { %v1474_v20 = vpack.c.bf16 %v1473_v19, %v1473_v19 }
0x2877   :  { %1476 = vrot.lane.b32.xlu1 %v1474_v20, %s2431_s20 }
0x28e9   :  { %v1477_v22 = vpop.permute.xlu1 %1476 }
0x28ea   :  { %2066 = vmatmul.mubr.msk.bf16.vlgmr.msra.gmra.mxu1 %vm234_vm2, %v1477_v22 }
0x28eb   :  { %2078 = vmatpush3.bf16.msra.mxu1 %v2711_v50  ;;  %2081 = vmatprep.mubr.msk.bf16.mxu1 %vm2444_vm0, %v2443_v0 }
0x28ec   :  { %2079 = vmatprep.subr.bf16.mxu1 %v2443_v0 }
0x28ef   :  { %2080 = vmatpush3.bf16.msra.mxu1 %v2715_v52 }
0x29aa   :  { %v1515_v23 = vpop.f32.mrf.mxu1 }
0x29ab   :  { %v1531_v24 = vadd.f32 %v1515_v23, %v2741_v2  ;;  %v1522_v30 = vrot.slane %v1515_v23, 6 }
0x29ac   :  { %v2067_v25 = vpop.f32.mrf.mxu1 }
0x29ad   :  { %v1533_v26 = vrot.slane %v1531_v24, 6  ;;  %v1524_v31 = vadd.f32 %v1522_v30, %v2755_v15 }
0x29ae   :  { %v1518_v27 = vpop.f32.mrf.mxu1 }
0x29af   :  { %1534 = vrot.lane.b32.xlu0 %v1533_v26, %s2431_s20  ;;  %v1870_v50 = vmul.f32 -1.442695, %v1524_v31 }
0x29b0   :  { %v2068_v28 = vpop.f32.mrf.mxu1 }
0x29b1   :  { %2200 = vpow2.f32 %v1870_v50 }
0x29be   :  { %v2201_v32 = vpop.eup %2200 }
0x29bf   :  { %v1528_v34 = vadd.f32 1.0, %v2201_v32 }
0x29c1   :  { %2202 = vrcp.f32 %v1528_v34 }
0x29ce   :  { %v2203_v35 = vpop.eup %2202 }
0x2a21   :  { %v1535_v36 = vpop.permute.xlu0 %1534 }
0x2a22   :  { %v1537_v52 = vmul.f32 %v2203_v35, %v1535_v36  ;;  %v2120_v36 = vld [vmem:[%s2879_s9 + $0x8] sm:$0xff]  }
0x2a24   :  { %1539 = vrot.lane.b32.xlu1 %v1537_v52, %s2431_s20  ;;  %v2121_v52 = vld [vmem:[%s2879_s9] sm:$0xff]   ;;  %s2448_s9 = smov [#allocation18]  }
0x2a25   :  { %s1810_s12 = sshll.u32 %s2448_s9, 4  ;;  %s1811_s12 = int_to_ptr.vmem [resolvable:$true] %s1810_s12 }
0x2a26   :  { %s2398_s7 = scalar_lea.vmem %s1811_s12, 32  ;;  %p2403_p4 = scmp.lt.s32.totalorder %s1811_s12, %s1811_s12 }
0x2a27   :  { %p2399_p3 = scmp.ne.s32.totalorder %s1811_s12, %s2398_s7  ;;  %p2404_p5 = scmp.lt.s32.totalorder %s2398_s7, %s2398_s7 }
0x2a29   :  { %p2405_p6 = por %p2404_p5, %p2403_p4 }
0x2a2b   :  { %p2406_p7 = pnand %p2405_p6, %p2399_p3 }
0x2a96   :  { %v1540_v38 = vpop.permute.xlu1 %1539 }
0x2a97   :  { %v1542_v39 = vadd.f32 %v1540_v38, %v2755_v15 }
0x2a99   :  { %2204 = vtanh.f32 %v1542_v39 }
0x2aa6   :  { %v2205_v1 = vpop.eup %2204 }
0x2aa7   :  { %v1545_v40 = vrot.slane %v2205_v1, 2 }
0x2aa9   :  { %v1547_v41 = vsub.f32 %v1473_v19, %v1545_v40 }
0x2aab   :  { %v1549_v42 = vrot.slane %v1547_v41, 6 }
0x2aad   :  { %1550 = vrot.lane.b32.xlu0 %v1549_v42, %s2446_s6 }
0x2b1f   :  { %v1551_v3 = vpop.permute.xlu0 %1550 }
0x2b20   :  { %v1553_v43 = vmul.f32 %v2203_v35, %v1551_v3  ;;  %v1875_v3 = vld [vmem:[%s2880_s10] ss:$0 sm:$0xff] }
0x2b22   :  { %1555 = vrot.lane.b32.xlu1 %v1553_v43, %s2447_s8 }
0x2b94   :  { %v1556_v10 = vpop.permute.xlu1 %1555 }
0x2b95   :  { %v1558_v44 = vadd.f32 %v2205_v1, %v1556_v10 }
0x2b97   :  { %v1559_v45 = vpack.c.bf16 %v1558_v44, %v1558_v44 }
0x2b99   :  { %v1561_v46 = vrot.slane %v1559_v45, 1 }
0x2b9b   :  { %1562 = vrot.lane.b32.xlu0 %v1561_v46, %s2431_s20 }
0x2c0d   :  { %v1563_v47 = vpop.permute.xlu0 %1562 }
0x2c0e   :  { %2074 = vmatmul.mubr.msk.bf16.vlgmr.msra.gmra.mxu0 %vm234_vm2, %v1563_v47 }
0x2c0f   :  { %2089 = vmatprep.mubr.msk.bf16.mxu0 %vm2444_vm0, %v2443_v0  ;;  %2086 = vmatpush3.bf16.msra.mxu0 %v2120_v36 }
0x2c10   :  { %2087 = vmatprep.subr.bf16.mxu0 %v2443_v0 }
0x2c13   :  { %2088 = vmatpush3.bf16.msra.mxu0 %v2121_v52 }
0x2cce   :  { %v1601_v48 = vpop.f32.mrf.mxu0 }
0x2ccf   :  { %v1617_v49 = vadd.f32 %v1601_v48, %v2741_v2  ;;  %v1608_v63 = vrot.slane %v1601_v48, 4 }
0x2cd0   :  { %v2075_v17 = vpop.f32.mrf.mxu0 }
0x2cd1   :  { %v1619_v51 = vrot.slane %v1617_v49, 4  ;;  %v1610_v8 = vadd.f32 %v1608_v63, %v2755_v15 }
0x2cd2   :  { %v1604_v37 = vpop.f32.mrf.mxu0 }
0x2cd3   :  { %1620 = vrot.lane.b32.xlu1 %v1619_v51, %s2431_s20  ;;  %v1872_v61 = vmul.f32 -1.442695, %v1610_v8 }
0x2cd4   :  { %v2076_v33 = vpop.f32.mrf.mxu0 }
0x2cd5   :  { %2206 = vpow2.f32 %v1872_v61 }
0x2ce2   :  { %v2207_v29 = vpop.eup %2206 }
0x2ce3   :  { %v1614_v11 = vadd.f32 1.0, %v2207_v29 }
0x2ce5   :  { %2208 = vrcp.f32 %v1614_v11 }
0x2cf2   :  { %v2209_v53 = vpop.eup %2208 }
0x2d45   :  { %v1621_v54 = vpop.permute.xlu1 %1620 }
0x2d46   :  { %v1623_v55 = vmul.f32 %v2209_v53, %v1621_v54 }
0x2d48   :  { %1625 = vrot.lane.b32.xlu0 %v1623_v55, %s2431_s20 }
0x2dba   :  { %v1626_v56 = vpop.permute.xlu0 %1625 }
0x2dbb   :  { %v1628_v57 = vadd.f32 %v1626_v56, %v2755_v15 }
0x2dbd   :  { %2210 = vtanh.f32 %v1628_v57 }
0x2dca   :  { %v2211_v58 = vpop.eup %2210 }
0x2dcb   :  { %v1631_v59 = vrot.slane %v2211_v58, 2 }
0x2dcd   :  { %v1633_v60 = vsub.f32 %v1558_v44, %v1631_v59 }
0x2dcf   :  { %v1635_v62 = vrot.slane %v1633_v60, 6 }
0x2dd1   :  { %1636 = vrot.lane.b32.xlu1 %v1635_v62, %s2446_s6 }
0x2e43   :  { %v1637_v21 = vpop.permute.xlu1 %1636 }
0x2e44   :  { %v1639_v4 = vmul.f32 %v2209_v53, %v1637_v21 }
0x2e46   :  { %1641 = vrot.lane.b32.xlu0 %v1639_v4, %s2447_s8 }
0x2eb8   :  { %v1642_v5 = vpop.permute.xlu0 %1641 }
0x2eb9   :  { %v1644_v6 = vadd.f32 %v2211_v58, %v1642_v5 }
0x2ebb   :  { %v1645_v7 = vpack.c.bf16 %v1644_v6, %v1644_v6 }
0x2ebd   :  { %v1647_v9 = vrot.slane %v1645_v7, 2 }
0x2ebf   :  { %1648 = vrot.lane.b32.xlu1 %v1647_v9, %s2431_s20 }
0x2f31   :  { %v1649_v12 = vpop.permute.xlu1 %1648 }
0x2f32   :  { %2082 = vmatmul.mubr.msk.bf16.vlgmr.msra.gmra.mxu1 %vm234_vm2, %v1649_v12 }
0x2ff2   :  { %v1687_v13 = vpop.f32.mrf.mxu1 }
0x2ff3   :  { %v1703_v14 = vadd.f32 %v1687_v13, %v2741_v2  ;;  %v1694_v22 = vrot.slane %v1687_v13, 2 }
0x2ff4   :  { %v2083_v16 = vpop.f32.mrf.mxu1 }
0x2ff5   :  { %v1705_v18 = vrot.slane %v1703_v14, 2  ;;  %v1696_v23 = vadd.f32 %v1694_v22, %v2755_v15 }
0x2ff6   :  { %v1690_v19 = vpop.f32.mrf.mxu1 }
0x2ff7   :  { %1706 = vrot.lane.b32.xlu0 %v1705_v18, %s2431_s20  ;;  %v1874_v24 = vmul.f32 -1.442695, %v1696_v23 }
0x2ff8   :  { %v2084_v20 = vpop.f32.mrf.mxu1 }
0x2ff9   :  { %2212 = vpow2.f32 %v1874_v24 }
0x3006   :  { %v2213_v25 = vpop.eup %2212 }
0x3007   :  { %v1700_v26 = vadd.f32 1.0, %v2213_v25 }
0x3009   :  { %2214 = vrcp.f32 %v1700_v26 }
0x3016   :  { %v2215_v27 = vpop.eup %2214 }
0x3069   :  { %v1707_v28 = vpop.permute.xlu0 %1706 }
0x306a   :  { %v1709_v30 = vmul.f32 %v2215_v27, %v1707_v28 }
0x306c   :  { %1711 = vrot.lane.b32.xlu1 %v1709_v30, %s2431_s20 }
0x30de   :  { %v1712_v2 = vpop.permute.xlu1 %1711 }
0x30df   :  { %v1714_v31 = vadd.f32 %v1712_v2, %v2755_v15 }
0x30e1   :  { %2216 = vtanh.f32 %v1714_v31 }
0x30ee   :  { %v2217_v50 = vpop.eup %2216 }
0x30ef   :  { %v1717_v32 = vrot.slane %v2217_v50, 2 }
0x30f1   :  { %v1719_v34 = vsub.f32 %v1644_v6, %v1717_v32 }
0x30f3   :  { %v1721_v35 = vrot.slane %v1719_v34, 6 }
0x30f5   :  { %1722 = vrot.lane.b32.xlu0 %v1721_v35, %s2446_s6 }
0x3167   :  { %v1723_v38 = vpop.permute.xlu0 %1722 }
0x3168   :  { %v1725_v15 = vmul.f32 %v2215_v27, %v1723_v38 }
0x316a   :  { %1727 = vrot.lane.b32.xlu1 %v1725_v15, %s2447_s8 }
0x31dc   :  { %v1728_v39 = vpop.permute.xlu1 %1727 }
0x31dd   :  { %v1730_v1 = vadd.f32 %v2217_v50, %v1728_v39 }
0x31df   :  { %v1731_v40 = vpack.c.bf16 %v1730_v1, %v1730_v1 }
0x31e1   :  { %v1744_v41 = vrot.slane %v1731_v40, 3 }
0x31e3   :  { %1745 = vrot.lane.b32.xlu0 %v1744_v41, %s2431_s20 }
0x3255   :  { %v1746_v42 = vpop.permute.xlu0 %1745 }
0x3256   :  { %2090 = vmatmul.mubr.msk.bf16.vlgmr.msra.gmra.mxu0 %vm234_vm2, %v1746_v42 }
0x3316   :  { %v1796_v0 = vpop.f32.mrf.mxu0 }
0x3317   :  { %v1797_v43 = vadd.f32 %v1875_v3, %v1796_v0 }
0x3318   :  { %v2091_v10 = vpop.f32.mrf.mxu0 }
0x3319   :  { %1803 = vst.msk [vmem:[#allocation18] sm:$0x3] %vm1802_vm7, %v1797_v43 }
0x331a   :  { %v1799_v44 = vpop.f32.mrf.mxu0 }
0x331b   :  { %2409 = shalt.err (!%p2406_p7)
}
0x331c   :  { %1813 = dma.vmem_to_hbm [thread:$0]  %s1811_s12, 32, %s2881_s11, [#allocation5]   ;;  %v2092_v45 = vpop.f32.mrf.mxu0 }
0x331d   :  { %2428 = dma.done.wait [#allocation5], 32  }
0x331e   :  { %2429 = vsyncadd [#allocation5], 4294967264 }
0x331f   :  { %1817 = vsyncpa [#allocation4], 1 }
0x3320   :  { %1818 = vsyncpa [#allocation7], 1 }
0x3321   :  { %1819 = vsyncpa [#allocation10], 1 }
0x3322   :  { %1820 = vsyncpa [#allocation13], 1 }
0x3323   :  { %1821 = vsyncpa [#allocation16], 1 }
0x3324   :  { %1822 = vsyncpa [#allocation5], 1 }

</bundles_post_ra>
